<compile_context>
chip_gen: v6e
topology: v6e:2x2x1
jax: 0.10.0
libtpu: 0.0.40
codegen_flags: <defaults>
</compile_context>

<pallas_src>
import jax
import jax.numpy as jnp
from jax import lax
from jax.experimental import pallas as pl
from jax.experimental.pallas import tpu as pltpu


def _round_up(x, m):
    return (x + m - 1) // m * m


@jax.jit
def rnn_decoder_decode(tgt_seq, tgt_pos, src_enc, src_hiddens, params):
    """Teacher-forced decode of T steps in one fused pallas_call.
    tgt_seq/tgt_pos: int32 [B, T]; src_enc: [B, S, H]; src_hiddens: [1, B, H].
    Returns (outputs [B, T, H], hiddens [1, B, H])."""
    B, T = tgt_seq.shape
    _, S, H = src_enc.shape
    Bp, Hp = _round_up(B, 8), _round_up(H, 128)
    G3 = 3 * Hp

    # ---- XLA prologue (off the serial recurrence path) --------------------
    # Embedding gathers + the input-side GRU projection: x_t does not depend
    # on h, so all T*B rows go through ONE matmul here instead of 3 tiny
    # matmuls per decode step inside the kernel.
    x = params['embed'][tgt_seq] + params['pos_embed'][tgt_pos]        # [B,T,E]
    x = jnp.transpose(x, (1, 0, 2)).reshape(T * B, -1)                 # [T*B,E]
    gi = x @ params['w_i'] + params['b_i']                             # [T*B,3Hp]
    gi = jnp.pad(gi.reshape(T, B, G3),
                 ((0, 0), (0, Bp - B), (0, 0))).reshape(T * Bp, G3)
    h0 = jnp.pad(src_hiddens[0], ((0, Bp - B), (0, Hp - H)))           # [Bp,Hp]
    mem = jnp.pad(src_enc, ((0, Bp - B), (0, 0), (0, Hp - H)))         # [Bp,S,Hp]

    # ---- fused multi-step decode kernel ------------------------------------
    def kernel(gi_ref, h0_ref, mem_ref, w_h_ref, b_hn_ref, wt_ref, b_t_ref,
               out_ref, hfin_ref, hc_scr):
        mem_v = mem_ref[...]                     # [Bp, S, Hp] f32, resident
        w_h = w_h_ref[...]                       # [Hp, 3*Hp] bf16, resident
        b_hn = b_hn_ref[...]                     # [1, Hp] f32

        def step(t, h):                          # h: [Bp, Hp] f32, in vregs
            off = pl.multiple_of(t * Bp, Bp)
            gi_t = gi_ref[pl.ds(off, Bp), :]     # [Bp, 3*Hp] f32 (biases fused)

            # one packed hidden matmul per step; bf16 operands, f32 accumulate
            gh = jnp.dot(h.astype(jnp.bfloat16), w_h,
                         preferred_element_type=jnp.float32)           # [Bp,3Hp]

            r = jax.nn.sigmoid(gi_t[:, :Hp] + gh[:, :Hp])
            z = jax.nn.sigmoid(gi_t[:, Hp:2 * Hp] + gh[:, Hp:2 * Hp])
            n = jnp.tanh(gi_t[:, 2 * Hp:] + r * (gh[:, 2 * Hp:] + b_hn))
            h_new = (1.0 - z) * n + z * h                              # f32

            # dot-product attention over encoder memory (VPU mul + reduce)
            scores = jnp.sum(h_new[:, None, :] * mem_v, axis=-1)       # [Bp,S]
            m = jnp.max(scores, axis=-1, keepdims=True)
            p = jnp.exp(scores - m)
            attn = p * pl.reciprocal(jnp.sum(p, axis=-1, keepdims=True),
                                     approx=True)
            ctx = jnp.sum(attn[:, :, None] * mem_v, axis=1)            # [Bp,Hp]

            # stash cat(h, ctx); the trans matmul runs once after the loop
            hc_scr[pl.ds(off, Bp), pl.ds(0, Hp)] = h_new
            hc_scr[pl.ds(off, Bp), pl.ds(Hp, Hp)] = ctx
            return h_new

        h_fin = lax.fori_loop(0, T, step, h0_ref[...], unroll=True)
        hfin_ref[...] = h_fin

        # trans(cat(h, ctx)) for all T steps as ONE M=T*Bp matmul
        out_ref[...] = (jnp.dot(hc_scr[...].astype(jnp.bfloat16), wt_ref[...],
                                preferred_element_type=jnp.float32)
                        + b_t_ref[...])

    const2 = lambda i: (0, 0)
    const3 = lambda i: (0, 0, 0)

    out_flat, h_fin = pl.pallas_call(
        kernel,
        grid_spec=pltpu.PrefetchScalarGridSpec(
            num_scalar_prefetch=0,
            grid=(1,),                                # whole decode in one step
            in_specs=[
                pl.BlockSpec((T * Bp, G3), const2),   # gi (input projections)
                pl.BlockSpec((Bp, Hp), const2),       # h0
                pl.BlockSpec((Bp, S, Hp), const3),    # src_enc (resident)
                pl.BlockSpec((Hp, G3), const2),       # packed W_h (bf16)
                pl.BlockSpec((1, Hp), const2),        # b_hn
                pl.BlockSpec((2 * Hp, Hp), const2),   # packed W_trans (bf16)
                pl.BlockSpec((1, Hp), const2),        # b_trans
            ],
            out_specs=(
                pl.BlockSpec((T * Bp, Hp), const2),   # all step outputs (1 DMA)
                pl.BlockSpec((Bp, Hp), const2),       # final hidden
            ),
            scratch_shapes=[pltpu.VMEM((T * Bp, 2 * Hp), jnp.float32)],
        ),
        out_shape=(jax.ShapeDtypeStruct((T * Bp, Hp), jnp.float32),
                   jax.ShapeDtypeStruct((Bp, Hp), jnp.float32)),
        input_output_aliases={1: 1},                  # h0 <-> final hidden
        compiler_params=pltpu.CompilerParams(
            dimension_semantics=("arbitrary",)),
    )(gi, h0, mem, params['w_h'], params['b_hn'], params['wt'], params['b_t'])

    outputs = out_flat.reshape(T, Bp, Hp)[:, :B, :H].transpose(1, 0, 2)
    return outputs, h_fin[:B, :H][None]


def init_raw_params(key, vocab_size, embed_dim, hidden_size, n_position):
    """PyTorch-layout parameters (for the pure-JAX reference)."""
    ks = jax.random.split(key, 8)
    s = 0.1
    H, E = hidden_size, embed_dim
    return dict(
        embed=jax.random.normal(ks[0], (vocab_size, E), jnp.float32) * s,
        pos_embed=jax.random.normal(ks[1], (n_position, E), jnp.float32) * s,
        w_ih=jax.random.normal(ks[2], (3 * H, E), jnp.float32) * s,    # GRU weight_ih
        w_hh=jax.random.normal(ks[3], (3 * H, H), jnp.float32) * s,    # GRU weight_hh
        b_ih=jax.random.normal(ks[4], (3 * H,), jnp.float32) * s,
        b_hh=jax.random.normal(ks[5], (3 * H,), jnp.float32) * s,
        w_trans=jax.random.normal(ks[6], (H, 2 * H), jnp.float32) * s,  # nn.Linear(2H,H)
        b_trans=jax.random.normal(ks[7], (H,), jnp.float32) * s,
    )


def pack_params(raw, hidden_size):
    """Pack PyTorch-layout weights into lane-padded, gate-packed matrices."""
    H = hidden_size
    Hp = _round_up(H, 128)

    pad_cols = lambda a, c: jnp.pad(a, ((0, 0), (0, c - a.shape[1])))
    pad2 = lambda a, r, c: jnp.pad(a, ((0, r - a.shape[0]), (0, c - a.shape[1])))
    pad_vec = lambda v, n: jnp.pad(v, (0, n - v.shape[0]))

    w_ih, w_hh, b_ih, b_hh = raw['w_ih'], raw['w_hh'], raw['b_ih'], raw['b_hh']
    w_t = raw['w_trans']
    gate = lambda w, g: w[g * H:(g + 1) * H]

    # input-side projection (hoisted to XLA): per-gate lane padding to Hp.
    # r/z biases fold b_ih + b_hh; n keeps only b_in (b_hn applied inside r*()).
    w_i = jnp.concatenate([pad_cols(gate(w_ih, g).T, Hp) for g in range(3)],
                          axis=1)                                       # [E, 3Hp]
    b_i = jnp.concatenate([pad_vec(b_ih[:H] + b_hh[:H], Hp),
                           pad_vec(b_ih[H:2 * H] + b_hh[H:2 * H], Hp),
                           pad_vec(b_ih[2 * H:], Hp)], axis=0)          # [3Hp]

    # recurrent weights packed [Hp, 3*Hp]; bf16 MXU operands (f32 accumulate)
    w_h = jnp.concatenate([pad2(gate(w_hh, g).T, Hp, Hp) for g in range(3)],
                          axis=1).astype(jnp.bfloat16)
    b_hn = pad_vec(b_hh[2 * H:], Hp)[None, :]

    # trans(cat(h, ctx)) packed as one [2*Hp, Hp] matmul
    wt = jnp.concatenate([pad2(w_t[:, :H].T, Hp, Hp),
                          pad2(w_t[:, H:].T, Hp, Hp)],
                         axis=0).astype(jnp.bfloat16)
    b_tp = pad_vec(raw['b_trans'], Hp)[None, :]

    return dict(embed=raw['embed'], pos_embed=raw['pos_embed'],
                w_i=w_i, b_i=b_i, w_h=w_h, b_hn=b_hn, wt=wt, b_t=b_tp)


def reference_decode(tgt_seq, tgt_pos, src_enc, src_hiddens, raw):
    """Pure-JAX f32 reference of the module forward applied T times."""
    H = src_enc.shape[-1]
    emb = raw['embed'][tgt_seq] + raw['pos_embed'][tgt_pos]            # [B, T, E]
    h = src_hiddens[0]
    outs = []
    for t in range(tgt_seq.shape[1]):
        x = emb[:, t]
        gi = x @ raw['w_ih'].T + raw['b_ih']
        gh = h @ raw['w_hh'].T + raw['b_hh']
        r = jax.nn.sigmoid(gi[:, :H] + gh[:, :H])
        z = jax.nn.sigmoid(gi[:, H:2 * H] + gh[:, H:2 * H])
        n = jnp.tanh(gi[:, 2 * H:] + r * gh[:, 2 * H:])
        h = (1.0 - z) * n + z * h
        scores = jnp.einsum('bh,bsh->bs', h, src_enc)
        attn = jax.nn.softmax(scores, axis=-1)
        ctx = jnp.einsum('bs,bsh->bh', attn, src_enc)
        outs.append(jnp.concatenate([h, ctx], axis=1) @ raw['w_trans'].T
                    + raw['b_trans'])
    return jnp.stack(outs, axis=1), h[None]


if __name__ == "__main__":
    B, S, E, H, T = 2, 8, 32, 32, 4
    vocab_size, n_position = 50, 64

    key = jax.random.PRNGKey(0)
    k_par, k_seq, k_enc, k_hid = jax.random.split(key, 4)

    raw = init_raw_params(k_par, vocab_size, E, H, n_position)
    params = pack_params(raw, H)

    tgt_seq = jax.random.randint(k_seq, (B, T), 0, vocab_size, dtype=jnp.int32)
    tgt_pos = jnp.tile(jnp.arange(T, dtype=jnp.int32)[None, :], (B, 1)) % n_position
    src_enc = jax.random.normal(k_enc, (B, S, H), jnp.float32)
    src_hiddens = jax.random.normal(k_hid, (1, B, H), jnp.float32)

    outputs, hiddens = rnn_decoder_decode(tgt_seq, tgt_pos, src_enc,
                                          src_hiddens, params)
    jax.block_until_ready((outputs, hiddens))

    ref_out, ref_h = reference_decode(tgt_seq, tgt_pos, src_enc, src_hiddens, raw)
    assert outputs.shape == (B, T, H) and hiddens.shape == (1, B, H)
    # Tolerance accounts for bf16 MXU operands in the recurrent / trans matmuls
    # (f32 accumulation, f32 state) + approx softmax reciprocal, compared
    # against an all-f32 reference.
    assert jnp.allclose(outputs, ref_out, atol=5e-2, rtol=5e-2)
    assert jnp.allclose(hiddens, ref_h, atol=5e-2, rtol=5e-2)
    print("KERNEL_OK")
</pallas_src>

<mosaic_0001>
module attributes {stable_mosaic.version = 11 : i64} {
  func.func @kernel(%arg0: i32, %arg1: memref<32x384xf32, #tpu.memory_space<vmem>>, %arg2: memref<8x128xf32, #tpu.memory_space<vmem>>, %arg3: memref<8x8x128xf32, #tpu.memory_space<vmem>>, %arg4: memref<128x384xbf16, #tpu.memory_space<vmem>>, %arg5: memref<1x128xf32, #tpu.memory_space<vmem>>, %arg6: memref<256x128xbf16, #tpu.memory_space<vmem>>, %arg7: memref<1x128xf32, #tpu.memory_space<vmem>>, %arg8: memref<32x128xf32, #tpu.memory_space<vmem>>, %arg9: memref<8x128xf32, #tpu.memory_space<vmem>>, %arg10: memref<32x256xf32, #tpu.memory_space<vmem>>) attributes {dimension_semantics = [#tpu.dimension_semantics<arbitrary>], iteration_bounds = array<i64: 1>, scalar_prefetch = 0 : i64, scratch_operands = 1 : i64, tpu.core_type = #tpu.core_type<tc>, window_params = [{pipeline_mode = #tpu.pipeline_mode<synchronous>, transform_indices = @transform_0, window_bounds = array<i64: 32, 384>}, {pipeline_mode = #tpu.pipeline_mode<synchronous>, transform_indices = @transform_1, window_bounds = array<i64: 8, 128>}, {pipeline_mode = #tpu.pipeline_mode<synchronous>, transform_indices = @transform_2, window_bounds = array<i64: 8, 8, 128>}, {pipeline_mode = #tpu.pipeline_mode<synchronous>, transform_indices = @transform_3, window_bounds = array<i64: 128, 384>}, {pipeline_mode = #tpu.pipeline_mode<synchronous>, transform_indices = @transform_4, window_bounds = array<i64: 1, 128>}, {pipeline_mode = #tpu.pipeline_mode<synchronous>, transform_indices = @transform_5, window_bounds = array<i64: 256, 128>}, {pipeline_mode = #tpu.pipeline_mode<synchronous>, transform_indices = @transform_6, window_bounds = array<i64: 1, 128>}, {pipeline_mode = #tpu.pipeline_mode<synchronous>, transform_indices = @transform_7, window_bounds = array<i64: 32, 128>}, {pipeline_mode = #tpu.pipeline_mode<synchronous>, transform_indices = @transform_8, window_bounds = array<i64: 8, 128>}]} {
    %c0 = arith.constant 0 : index
    %c0_0 = arith.constant 0 : index
    %c0_1 = arith.constant 0 : index
    %0 = vector.load %arg3[%c0, %c0_0, %c0_1] : memref<8x8x128xf32, #tpu.memory_space<vmem>>, vector<8x8x128xf32>
    %c0_2 = arith.constant 0 : index
    %c0_3 = arith.constant 0 : index
    %1 = vector.load %arg4[%c0_2, %c0_3] : memref<128x384xbf16, #tpu.memory_space<vmem>>, vector<128x384xbf16>
    %c0_4 = arith.constant 0 : index
    %c0_5 = arith.constant 0 : index
    %2 = vector.load %arg5[%c0_4, %c0_5] : memref<1x128xf32, #tpu.memory_space<vmem>>, vector<1x128xf32>
    %c0_6 = arith.constant 0 : index
    %c0_7 = arith.constant 0 : index
    %3 = vector.load %arg2[%c0_6, %c0_7] : memref<8x128xf32, #tpu.memory_space<vmem>>, vector<8x128xf32>
    %c0_i32 = arith.constant 0 : i32
    %c8_i32 = arith.constant 8 : i32
    %4 = arith.muli %c0_i32, %c8_i32 : i32
    %5 = tpu.assume_multiple %4, 8 : i32
    %6 = arith.index_cast %5 : i32 to index
    %c0_8 = arith.constant 0 : index
    %7 = vector.load %arg1[%6, %c0_8] : memref<32x384xf32, #tpu.memory_space<vmem>>, vector<8x384xf32>
    %8 = arith.truncf %3 : vector<8x128xf32> to vector<8x128xbf16>
    %cst = arith.constant dense<0.000000e+00> : vector<8x384xf32>
    %9 = tpu.matmul %8, %1, %cst {dimension_numbers = #tpu.dot_dimension_numbers<[1], [0], [0], [1], [0, 0, 1, 1], [], []>} : vector<8x128xbf16>, vector<128x384xbf16>, vector<8x384xf32> -> vector<8x384xf32>
    %10 = vector.extract_strided_slice %7 {offsets = [0, 0], sizes = [8, 128], strides = [1, 1]} : vector<8x384xf32> to vector<8x128xf32>
    %11 = vector.extract_strided_slice %9 {offsets = [0, 0], sizes = [8, 128], strides = [1, 1]} : vector<8x384xf32> to vector<8x128xf32>
    %12 = arith.addf %10, %11 : vector<8x128xf32>
    %13 = arith.negf %12 : vector<8x128xf32>
    %14 = math.exp %13 : vector<8x128xf32>
    %cst_9 = arith.constant 1.000000e+00 : f32
    %15 = vector.broadcast %cst_9 : f32 to vector<8x128xf32>
    %16 = arith.addf %15, %14 : vector<8x128xf32>
    %17 = arith.divf %15, %16 : vector<8x128xf32>
    %18 = vector.extract_strided_slice %7 {offsets = [0, 128], sizes = [8, 128], strides = [1, 1]} : vector<8x384xf32> to vector<8x128xf32>
    %19 = vector.extract_strided_slice %9 {offsets = [0, 128], sizes = [8, 128], strides = [1, 1]} : vector<8x384xf32> to vector<8x128xf32>
    %20 = arith.addf %18, %19 : vector<8x128xf32>
    %21 = arith.negf %20 : vector<8x128xf32>
    %22 = math.exp %21 : vector<8x128xf32>
    %cst_10 = arith.constant 1.000000e+00 : f32
    %23 = vector.broadcast %cst_10 : f32 to vector<8x128xf32>
    %24 = arith.addf %23, %22 : vector<8x128xf32>
    %25 = arith.divf %23, %24 : vector<8x128xf32>
    %26 = vector.extract_strided_slice %7 {offsets = [0, 256], sizes = [8, 128], strides = [1, 1]} : vector<8x384xf32> to vector<8x128xf32>
    %27 = vector.extract_strided_slice %9 {offsets = [0, 256], sizes = [8, 128], strides = [1, 1]} : vector<8x384xf32> to vector<8x128xf32>
    %28 = vector.broadcast %2 : vector<1x128xf32> to vector<8x128xf32>
    %29 = arith.addf %27, %28 : vector<8x128xf32>
    %30 = arith.mulf %17, %29 : vector<8x128xf32>
    %31 = arith.addf %26, %30 : vector<8x128xf32>
    %32 = math.tanh %31 : vector<8x128xf32>
    %cst_11 = arith.constant 1.000000e+00 : f32
    %33 = vector.broadcast %cst_11 : f32 to vector<8x128xf32>
    %34 = arith.subf %33, %25 : vector<8x128xf32>
    %35 = arith.mulf %34, %32 : vector<8x128xf32>
    %36 = arith.mulf %25, %3 : vector<8x128xf32>
    %37 = arith.addf %35, %36 : vector<8x128xf32>
    %38 = vector.shape_cast %37 : vector<8x128xf32> to vector<8x1x128xf32>
    %39 = vector.broadcast %38 : vector<8x1x128xf32> to vector<8x8x128xf32>
    %40 = arith.mulf %39, %0 : vector<8x8x128xf32>
    %cst_12 = arith.constant dense<0.000000e+00> : vector<8x8xf32>
    %41 = vector.multi_reduction <add>, %40, %cst_12 [2] : vector<8x8x128xf32> to vector<8x8xf32>
    %cst_13 = arith.constant dense<0xFF800000> : vector<8xf32>
    %42 = vector.multi_reduction <maximumf>, %41, %cst_13 [1] : vector<8x8xf32> to vector<8xf32>
    %43 = vector.shape_cast %42 : vector<8xf32> to vector<8x1xf32>
    %44 = vector.broadcast %43 : vector<8x1xf32> to vector<8x8xf32>
    %45 = arith.subf %41, %44 : vector<8x8xf32>
    %46 = math.exp %45 : vector<8x8xf32>
    %cst_14 = arith.constant dense<0.000000e+00> : vector<8xf32>
    %47 = vector.multi_reduction <add>, %46, %cst_14 [1] : vector<8x8xf32> to vector<8xf32>
    %48 = vector.shape_cast %47 : vector<8xf32> to vector<8x1xf32>
    %49 = tpu.reciprocal %48 {approx = true} : vector<8x1xf32> -> vector<8x1xf32>
    %50 = vector.broadcast %49 : vector<8x1xf32> to vector<8x8xf32>
    %51 = arith.mulf %46, %50 : vector<8x8xf32>
    %52 = vector.shape_cast %51 : vector<8x8xf32> to vector<8x8x1xf32>
    %53 = vector.broadcast %52 : vector<8x8x1xf32> to vector<8x8x128xf32>
    %54 = arith.mulf %53, %0 : vector<8x8x128xf32>
    %cst_15 = arith.constant dense<0.000000e+00> : vector<8x128xf32>
    %55 = vector.multi_reduction <add>, %54, %cst_15 [1] : vector<8x8x128xf32> to vector<8x128xf32>
    %56 = arith.index_cast %5 : i32 to index
    %c0_16 = arith.constant 0 : index
    %57 = vector.load %arg10[%56, %c0_16] : memref<32x256xf32, #tpu.memory_space<vmem>>, vector<8x128xf32>
    tpu.vector_store %arg10[%56, %c0_16], %37 {strides = array<i32>} : memref<32x256xf32, #tpu.memory_space<vmem>>, vector<8x128xf32>,
    %58 = arith.index_cast %5 : i32 to index
    %c128 = arith.constant 128 : index
    %59 = vector.load %arg10[%58, %c128] : memref<32x256xf32, #tpu.memory_space<vmem>>, vector<8x128xf32>
    tpu.vector_store %arg10[%58, %c128], %55 {strides = array<i32>} : memref<32x256xf32, #tpu.memory_space<vmem>>, vector<8x128xf32>,
    %c1_i32 = arith.constant 1 : i32
    %c8_i32_17 = arith.constant 8 : i32
    %60 = arith.muli %c1_i32, %c8_i32_17 : i32
    %61 = tpu.assume_multiple %60, 8 : i32
    %62 = arith.index_cast %61 : i32 to index
    %c0_18 = arith.constant 0 : index
    %63 = vector.load %arg1[%62, %c0_18] : memref<32x384xf32, #tpu.memory_space<vmem>>, vector<8x384xf32>
    %64 = arith.truncf %37 : vector<8x128xf32> to vector<8x128xbf16>
    %cst_19 = arith.constant dense<0.000000e+00> : vector<8x384xf32>
    %65 = tpu.matmul %64, %1, %cst_19 {dimension_numbers = #tpu.dot_dimension_numbers<[1], [0], [0], [1], [0, 0, 1, 1], [], []>} : vector<8x128xbf16>, vector<128x384xbf16>, vector<8x384xf32> -> vector<8x384xf32>
    %66 = vector.extract_strided_slice %63 {offsets = [0, 0], sizes = [8, 128], strides = [1, 1]} : vector<8x384xf32> to vector<8x128xf32>
    %67 = vector.extract_strided_slice %65 {offsets = [0, 0], sizes = [8, 128], strides = [1, 1]} : vector<8x384xf32> to vector<8x128xf32>
    %68 = arith.addf %66, %67 : vector<8x128xf32>
    %69 = arith.negf %68 : vector<8x128xf32>
    %70 = math.exp %69 : vector<8x128xf32>
    %cst_20 = arith.constant 1.000000e+00 : f32
    %71 = vector.broadcast %cst_20 : f32 to vector<8x128xf32>
    %72 = arith.addf %71, %70 : vector<8x128xf32>
    %73 = arith.divf %71, %72 : vector<8x128xf32>
    %74 = vector.extract_strided_slice %63 {offsets = [0, 128], sizes = [8, 128], strides = [1, 1]} : vector<8x384xf32> to vector<8x128xf32>
    %75 = vector.extract_strided_slice %65 {offsets = [0, 128], sizes = [8, 128], strides = [1, 1]} : vector<8x384xf32> to vector<8x128xf32>
    %76 = arith.addf %74, %75 : vector<8x128xf32>
    %77 = arith.negf %76 : vector<8x128xf32>
    %78 = math.exp %77 : vector<8x128xf32>
    %cst_21 = arith.constant 1.000000e+00 : f32
    %79 = vector.broadcast %cst_21 : f32 to vector<8x128xf32>
    %80 = arith.addf %79, %78 : vector<8x128xf32>
    %81 = arith.divf %79, %80 : vector<8x128xf32>
    %82 = vector.extract_strided_slice %63 {offsets = [0, 256], sizes = [8, 128], strides = [1, 1]} : vector<8x384xf32> to vector<8x128xf32>
    %83 = vector.extract_strided_slice %65 {offsets = [0, 256], sizes = [8, 128], strides = [1, 1]} : vector<8x384xf32> to vector<8x128xf32>
    %84 = vector.broadcast %2 : vector<1x128xf32> to vector<8x128xf32>
    %85 = arith.addf %83, %84 : vector<8x128xf32>
    %86 = arith.mulf %73, %85 : vector<8x128xf32>
    %87 = arith.addf %82, %86 : vector<8x128xf32>
    %88 = math.tanh %87 : vector<8x128xf32>
    %cst_22 = arith.constant 1.000000e+00 : f32
    %89 = vector.broadcast %cst_22 : f32 to vector<8x128xf32>
    %90 = arith.subf %89, %81 : vector<8x128xf32>
    %91 = arith.mulf %90, %88 : vector<8x128xf32>
    %92 = arith.mulf %81, %37 : vector<8x128xf32>
    %93 = arith.addf %91, %92 : vector<8x128xf32>
    %94 = vector.shape_cast %93 : vector<8x128xf32> to vector<8x1x128xf32>
    %95 = vector.broadcast %94 : vector<8x1x128xf32> to vector<8x8x128xf32>
    %96 = arith.mulf %95, %0 : vector<8x8x128xf32>
    %cst_23 = arith.constant dense<0.000000e+00> : vector<8x8xf32>
    %97 = vector.multi_reduction <add>, %96, %cst_23 [2] : vector<8x8x128xf32> to vector<8x8xf32>
    %cst_24 = arith.constant dense<0xFF800000> : vector<8xf32>
    %98 = vector.multi_reduction <maximumf>, %97, %cst_24 [1] : vector<8x8xf32> to vector<8xf32>
    %99 = vector.shape_cast %98 : vector<8xf32> to vector<8x1xf32>
    %100 = vector.broadcast %99 : vector<8x1xf32> to vector<8x8xf32>
    %101 = arith.subf %97, %100 : vector<8x8xf32>
    %102 = math.exp %101 : vector<8x8xf32>
    %cst_25 = arith.constant dense<0.000000e+00> : vector<8xf32>
    %103 = vector.multi_reduction <add>, %102, %cst_25 [1] : vector<8x8xf32> to vector<8xf32>
    %104 = vector.shape_cast %103 : vector<8xf32> to vector<8x1xf32>
    %105 = tpu.reciprocal %104 {approx = true} : vector<8x1xf32> -> vector<8x1xf32>
    %106 = vector.broadcast %105 : vector<8x1xf32> to vector<8x8xf32>
    %107 = arith.mulf %102, %106 : vector<8x8xf32>
    %108 = vector.shape_cast %107 : vector<8x8xf32> to vector<8x8x1xf32>
    %109 = vector.broadcast %108 : vector<8x8x1xf32> to vector<8x8x128xf32>
    %110 = arith.mulf %109, %0 : vector<8x8x128xf32>
    %cst_26 = arith.constant dense<0.000000e+00> : vector<8x128xf32>
    %111 = vector.multi_reduction <add>, %110, %cst_26 [1] : vector<8x8x128xf32> to vector<8x128xf32>
    %112 = arith.index_cast %61 : i32 to index
    %c0_27 = arith.constant 0 : index
    %113 = vector.load %arg10[%112, %c0_27] : memref<32x256xf32, #tpu.memory_space<vmem>>, vector<8x128xf32>
    tpu.vector_store %arg10[%112, %c0_27], %93 {strides = array<i32>} : memref<32x256xf32, #tpu.memory_space<vmem>>, vector<8x128xf32>,
    %114 = arith.index_cast %61 : i32 to index
    %c128_28 = arith.constant 128 : index
    %115 = vector.load %arg10[%114, %c128_28] : memref<32x256xf32, #tpu.memory_space<vmem>>, vector<8x128xf32>
    tpu.vector_store %arg10[%114, %c128_28], %111 {strides = array<i32>} : memref<32x256xf32, #tpu.memory_space<vmem>>, vector<8x128xf32>,
    %c2_i32 = arith.constant 2 : i32
    %c8_i32_29 = arith.constant 8 : i32
    %116 = arith.muli %c2_i32, %c8_i32_29 : i32
    %117 = tpu.assume_multiple %116, 8 : i32
    %118 = arith.index_cast %117 : i32 to index
    %c0_30 = arith.constant 0 : index
    %119 = vector.load %arg1[%118, %c0_30] : memref<32x384xf32, #tpu.memory_space<vmem>>, vector<8x384xf32>
    %120 = arith.truncf %93 : vector<8x128xf32> to vector<8x128xbf16>
    %cst_31 = arith.constant dense<0.000000e+00> : vector<8x384xf32>
    %121 = tpu.matmul %120, %1, %cst_31 {dimension_numbers = #tpu.dot_dimension_numbers<[1], [0], [0], [1], [0, 0, 1, 1], [], []>} : vector<8x128xbf16>, vector<128x384xbf16>, vector<8x384xf32> -> vector<8x384xf32>
    %122 = vector.extract_strided_slice %119 {offsets = [0, 0], sizes = [8, 128], strides = [1, 1]} : vector<8x384xf32> to vector<8x128xf32>
    %123 = vector.extract_strided_slice %121 {offsets = [0, 0], sizes = [8, 128], strides = [1, 1]} : vector<8x384xf32> to vector<8x128xf32>
    %124 = arith.addf %122, %123 : vector<8x128xf32>
    %125 = arith.negf %124 : vector<8x128xf32>
    %126 = math.exp %125 : vector<8x128xf32>
    %cst_32 = arith.constant 1.000000e+00 : f32
    %127 = vector.broadcast %cst_32 : f32 to vector<8x128xf32>
    %128 = arith.addf %127, %126 : vector<8x128xf32>
    %129 = arith.divf %127, %128 : vector<8x128xf32>
    %130 = vector.extract_strided_slice %119 {offsets = [0, 128], sizes = [8, 128], strides = [1, 1]} : vector<8x384xf32> to vector<8x128xf32>
    %131 = vector.extract_strided_slice %121 {offsets = [0, 128], sizes = [8, 128], strides = [1, 1]} : vector<8x384xf32> to vector<8x128xf32>
    %132 = arith.addf %130, %131 : vector<8x128xf32>
    %133 = arith.negf %132 : vector<8x128xf32>
    %134 = math.exp %133 : vector<8x128xf32>
    %cst_33 = arith.constant 1.000000e+00 : f32
    %135 = vector.broadcast %cst_33 : f32 to vector<8x128xf32>
    %136 = arith.addf %135, %134 : vector<8x128xf32>
    %137 = arith.divf %135, %136 : vector<8x128xf32>
    %138 = vector.extract_strided_slice %119 {offsets = [0, 256], sizes = [8, 128], strides = [1, 1]} : vector<8x384xf32> to vector<8x128xf32>
    %139 = vector.extract_strided_slice %121 {offsets = [0, 256], sizes = [8, 128], strides = [1, 1]} : vector<8x384xf32> to vector<8x128xf32>
    %140 = vector.broadcast %2 : vector<1x128xf32> to vector<8x128xf32>
    %141 = arith.addf %139, %140 : vector<8x128xf32>
    %142 = arith.mulf %129, %141 : vector<8x128xf32>
    %143 = arith.addf %138, %142 : vector<8x128xf32>
    %144 = math.tanh %143 : vector<8x128xf32>
    %cst_34 = arith.constant 1.000000e+00 : f32
    %145 = vector.broadcast %cst_34 : f32 to vector<8x128xf32>
    %146 = arith.subf %145, %137 : vector<8x128xf32>
    %147 = arith.mulf %146, %144 : vector<8x128xf32>
    %148 = arith.mulf %137, %93 : vector<8x128xf32>
    %149 = arith.addf %147, %148 : vector<8x128xf32>
    %150 = vector.shape_cast %149 : vector<8x128xf32> to vector<8x1x128xf32>
    %151 = vector.broadcast %150 : vector<8x1x128xf32> to vector<8x8x128xf32>
    %152 = arith.mulf %151, %0 : vector<8x8x128xf32>
    %cst_35 = arith.constant dense<0.000000e+00> : vector<8x8xf32>
    %153 = vector.multi_reduction <add>, %152, %cst_35 [2] : vector<8x8x128xf32> to vector<8x8xf32>
    %cst_36 = arith.constant dense<0xFF800000> : vector<8xf32>
    %154 = vector.multi_reduction <maximumf>, %153, %cst_36 [1] : vector<8x8xf32> to vector<8xf32>
    %155 = vector.shape_cast %154 : vector<8xf32> to vector<8x1xf32>
    %156 = vector.broadcast %155 : vector<8x1xf32> to vector<8x8xf32>
    %157 = arith.subf %153, %156 : vector<8x8xf32>
    %158 = math.exp %157 : vector<8x8xf32>
    %cst_37 = arith.constant dense<0.000000e+00> : vector<8xf32>
    %159 = vector.multi_reduction <add>, %158, %cst_37 [1] : vector<8x8xf32> to vector<8xf32>
    %160 = vector.shape_cast %159 : vector<8xf32> to vector<8x1xf32>
    %161 = tpu.reciprocal %160 {approx = true} : vector<8x1xf32> -> vector<8x1xf32>
    %162 = vector.broadcast %161 : vector<8x1xf32> to vector<8x8xf32>
    %163 = arith.mulf %158, %162 : vector<8x8xf32>
    %164 = vector.shape_cast %163 : vector<8x8xf32> to vector<8x8x1xf32>
    %165 = vector.broadcast %164 : vector<8x8x1xf32> to vector<8x8x128xf32>
    %166 = arith.mulf %165, %0 : vector<8x8x128xf32>
    %cst_38 = arith.constant dense<0.000000e+00> : vector<8x128xf32>
    %167 = vector.multi_reduction <add>, %166, %cst_38 [1] : vector<8x8x128xf32> to vector<8x128xf32>
    %168 = arith.index_cast %117 : i32 to index
    %c0_39 = arith.constant 0 : index
    %169 = vector.load %arg10[%168, %c0_39] : memref<32x256xf32, #tpu.memory_space<vmem>>, vector<8x128xf32>
    tpu.vector_store %arg10[%168, %c0_39], %149 {strides = array<i32>} : memref<32x256xf32, #tpu.memory_space<vmem>>, vector<8x128xf32>,
    %170 = arith.index_cast %117 : i32 to index
    %c128_40 = arith.constant 128 : index
    %171 = vector.load %arg10[%170, %c128_40] : memref<32x256xf32, #tpu.memory_space<vmem>>, vector<8x128xf32>
    tpu.vector_store %arg10[%170, %c128_40], %167 {strides = array<i32>} : memref<32x256xf32, #tpu.memory_space<vmem>>, vector<8x128xf32>,
    %c3_i32 = arith.constant 3 : i32
    %c8_i32_41 = arith.constant 8 : i32
    %172 = arith.muli %c3_i32, %c8_i32_41 : i32
    %173 = tpu.assume_multiple %172, 8 : i32
    %174 = arith.index_cast %173 : i32 to index
    %c0_42 = arith.constant 0 : index
    %175 = vector.load %arg1[%174, %c0_42] : memref<32x384xf32, #tpu.memory_space<vmem>>, vector<8x384xf32>
    %176 = arith.truncf %149 : vector<8x128xf32> to vector<8x128xbf16>
    %cst_43 = arith.constant dense<0.000000e+00> : vector<8x384xf32>
    %177 = tpu.matmul %176, %1, %cst_43 {dimension_numbers = #tpu.dot_dimension_numbers<[1], [0], [0], [1], [0, 0, 1, 1], [], []>} : vector<8x128xbf16>, vector<128x384xbf16>, vector<8x384xf32> -> vector<8x384xf32>
    %178 = vector.extract_strided_slice %175 {offsets = [0, 0], sizes = [8, 128], strides = [1, 1]} : vector<8x384xf32> to vector<8x128xf32>
    %179 = vector.extract_strided_slice %177 {offsets = [0, 0], sizes = [8, 128], strides = [1, 1]} : vector<8x384xf32> to vector<8x128xf32>
    %180 = arith.addf %178, %179 : vector<8x128xf32>
    %181 = arith.negf %180 : vector<8x128xf32>
    %182 = math.exp %181 : vector<8x128xf32>
    %cst_44 = arith.constant 1.000000e+00 : f32
    %183 = vector.broadcast %cst_44 : f32 to vector<8x128xf32>
    %184 = arith.addf %183, %182 : vector<8x128xf32>
    %185 = arith.divf %183, %184 : vector<8x128xf32>
    %186 = vector.extract_strided_slice %175 {offsets = [0, 128], sizes = [8, 128], strides = [1, 1]} : vector<8x384xf32> to vector<8x128xf32>
    %187 = vector.extract_strided_slice %177 {offsets = [0, 128], sizes = [8, 128], strides = [1, 1]} : vector<8x384xf32> to vector<8x128xf32>
    %188 = arith.addf %186, %187 : vector<8x128xf32>
    %189 = arith.negf %188 : vector<8x128xf32>
    %190 = math.exp %189 : vector<8x128xf32>
    %cst_45 = arith.constant 1.000000e+00 : f32
    %191 = vector.broadcast %cst_45 : f32 to vector<8x128xf32>
    %192 = arith.addf %191, %190 : vector<8x128xf32>
    %193 = arith.divf %191, %192 : vector<8x128xf32>
    %194 = vector.extract_strided_slice %175 {offsets = [0, 256], sizes = [8, 128], strides = [1, 1]} : vector<8x384xf32> to vector<8x128xf32>
    %195 = vector.extract_strided_slice %177 {offsets = [0, 256], sizes = [8, 128], strides = [1, 1]} : vector<8x384xf32> to vector<8x128xf32>
    %196 = vector.broadcast %2 : vector<1x128xf32> to vector<8x128xf32>
    %197 = arith.addf %195, %196 : vector<8x128xf32>
    %198 = arith.mulf %185, %197 : vector<8x128xf32>
    %199 = arith.addf %194, %198 : vector<8x128xf32>
    %200 = math.tanh %199 : vector<8x128xf32>
    %cst_46 = arith.constant 1.000000e+00 : f32
    %201 = vector.broadcast %cst_46 : f32 to vector<8x128xf32>
    %202 = arith.subf %201, %193 : vector<8x128xf32>
    %203 = arith.mulf %202, %200 : vector<8x128xf32>
    %204 = arith.mulf %193, %149 : vector<8x128xf32>
    %205 = arith.addf %203, %204 : vector<8x128xf32>
    %206 = vector.shape_cast %205 : vector<8x128xf32> to vector<8x1x128xf32>
    %207 = vector.broadcast %206 : vector<8x1x128xf32> to vector<8x8x128xf32>
    %208 = arith.mulf %207, %0 : vector<8x8x128xf32>
    %cst_47 = arith.constant dense<0.000000e+00> : vector<8x8xf32>
    %209 = vector.multi_reduction <add>, %208, %cst_47 [2] : vector<8x8x128xf32> to vector<8x8xf32>
    %cst_48 = arith.constant dense<0xFF800000> : vector<8xf32>
    %210 = vector.multi_reduction <maximumf>, %209, %cst_48 [1] : vector<8x8xf32> to vector<8xf32>
    %211 = vector.shape_cast %210 : vector<8xf32> to vector<8x1xf32>
    %212 = vector.broadcast %211 : vector<8x1xf32> to vector<8x8xf32>
    %213 = arith.subf %209, %212 : vector<8x8xf32>
    %214 = math.exp %213 : vector<8x8xf32>
    %cst_49 = arith.constant dense<0.000000e+00> : vector<8xf32>
    %215 = vector.multi_reduction <add>, %214, %cst_49 [1] : vector<8x8xf32> to vector<8xf32>
    %216 = vector.shape_cast %215 : vector<8xf32> to vector<8x1xf32>
    %217 = tpu.reciprocal %216 {approx = true} : vector<8x1xf32> -> vector<8x1xf32>
    %218 = vector.broadcast %217 : vector<8x1xf32> to vector<8x8xf32>
    %219 = arith.mulf %214, %218 : vector<8x8xf32>
    %220 = vector.shape_cast %219 : vector<8x8xf32> to vector<8x8x1xf32>
    %221 = vector.broadcast %220 : vector<8x8x1xf32> to vector<8x8x128xf32>
    %222 = arith.mulf %221, %0 : vector<8x8x128xf32>
    %cst_50 = arith.constant dense<0.000000e+00> : vector<8x128xf32>
    %223 = vector.multi_reduction <add>, %222, %cst_50 [1] : vector<8x8x128xf32> to vector<8x128xf32>
    %224 = arith.index_cast %173 : i32 to index
    %c0_51 = arith.constant 0 : index
    %225 = vector.load %arg10[%224, %c0_51] : memref<32x256xf32, #tpu.memory_space<vmem>>, vector<8x128xf32>
    tpu.vector_store %arg10[%224, %c0_51], %205 {strides = array<i32>} : memref<32x256xf32, #tpu.memory_space<vmem>>, vector<8x128xf32>,
    %226 = arith.index_cast %173 : i32 to index
    %c128_52 = arith.constant 128 : index
    %227 = vector.load %arg10[%226, %c128_52] : memref<32x256xf32, #tpu.memory_space<vmem>>, vector<8x128xf32>
    tpu.vector_store %arg10[%226, %c128_52], %223 {strides = array<i32>} : memref<32x256xf32, #tpu.memory_space<vmem>>, vector<8x128xf32>,
    %c4_i32 = arith.constant 4 : i32
    %c0_53 = arith.constant 0 : index
    %c0_54 = arith.constant 0 : index
    %228 = vector.load %arg9[%c0_53, %c0_54] : memref<8x128xf32, #tpu.memory_space<vmem>>, vector<8x128xf32>
    tpu.vector_store %arg9[%c0_53, %c0_54], %205 {strides = array<i32>} : memref<8x128xf32, #tpu.memory_space<vmem>>, vector<8x128xf32>,
    %c0_55 = arith.constant 0 : index
    %c0_56 = arith.constant 0 : index
    %229 = vector.load %arg10[%c0_55, %c0_56] : memref<32x256xf32, #tpu.memory_space<vmem>>, vector<32x256xf32>
    %230 = arith.truncf %229 : vector<32x256xf32> to vector<32x256xbf16>
    %c0_57 = arith.constant 0 : index
    %c0_58 = arith.constant 0 : index
    %231 = vector.load %arg6[%c0_57, %c0_58] : memref<256x128xbf16, #tpu.memory_space<vmem>>, vector<256x128xbf16>
    %cst_59 = arith.constant dense<0.000000e+00> : vector<32x128xf32>
    %232 = tpu.matmul %230, %231, %cst_59 {dimension_numbers = #tpu.dot_dimension_numbers<[1], [0], [0], [1], [0, 0, 1, 1], [], []>} : vector<32x256xbf16>, vector<256x128xbf16>, vector<32x128xf32> -> vector<32x128xf32>
    %c0_60 = arith.constant 0 : index
    %c0_61 = arith.constant 0 : index
    %233 = vector.load %arg7[%c0_60, %c0_61] : memref<1x128xf32, #tpu.memory_space<vmem>>, vector<1x128xf32>
    %234 = vector.broadcast %233 : vector<1x128xf32> to vector<32x128xf32>
    %235 = arith.addf %232, %234 : vector<32x128xf32>
    %c0_62 = arith.constant 0 : index
    %c0_63 = arith.constant 0 : index
    %236 = vector.load %arg8[%c0_62, %c0_63] : memref<32x128xf32, #tpu.memory_space<vmem>>, vector<32x128xf32>
    tpu.vector_store %arg8[%c0_62, %c0_63], %235 {strides = array<i32>} : memref<32x128xf32, #tpu.memory_space<vmem>>, vector<32x128xf32>,
    return
  }
  func.func @transform_0(%arg0: i32) -> (i32, i32) {
    %c0_i32 = arith.constant 0 : i32
    %c0_i32_0 = arith.constant 0 : i32
    %c0_i32_1 = arith.constant 0 : i32
    return %c0_i32, %c0_i32_0 : i32, i32
  }
  func.func @transform_1(%arg0: i32) -> (i32, i32) {
    %c0_i32 = arith.constant 0 : i32
    %c0_i32_0 = arith.constant 0 : i32
    %c0_i32_1 = arith.constant 0 : i32
    return %c0_i32, %c0_i32_0 : i32, i32
  }
  func.func @transform_2(%arg0: i32) -> (i32, i32, i32) {
    %c0_i32 = arith.constant 0 : i32
    %c0_i32_0 = arith.constant 0 : i32
    %c0_i32_1 = arith.constant 0 : i32
    %c0_i32_2 = arith.constant 0 : i32
    return %c0_i32, %c0_i32_0, %c0_i32_1 : i32, i32, i32
  }
  func.func @transform_3(%arg0: i32) -> (i32, i32) {
    %c0_i32 = arith.constant 0 : i32
    %c0_i32_0 = arith.constant 0 : i32
    %c0_i32_1 = arith.constant 0 : i32
    return %c0_i32, %c0_i32_0 : i32, i32
  }
  func.func @transform_4(%arg0: i32) -> (i32, i32) {
    %c0_i32 = arith.constant 0 : i32
    %c0_i32_0 = arith.constant 0 : i32
    %c0_i32_1 = arith.constant 0 : i32
    return %c0_i32, %c0_i32_0 : i32, i32
  }
  func.func @transform_5(%arg0: i32) -> (i32, i32) {
    %c0_i32 = arith.constant 0 : i32
    %c0_i32_0 = arith.constant 0 : i32
    %c0_i32_1 = arith.constant 0 : i32
    return %c0_i32, %c0_i32_0 : i32, i32
  }
  func.func @transform_6(%arg0: i32) -> (i32, i32) {
    %c0_i32 = arith.constant 0 : i32
    %c0_i32_0 = arith.constant 0 : i32
    %c0_i32_1 = arith.constant 0 : i32
    return %c0_i32, %c0_i32_0 : i32, i32
  }
  func.func @transform_7(%arg0: i32) -> (i32, i32) {
    %c0_i32 = arith.constant 0 : i32
    %c0_i32_0 = arith.constant 0 : i32
    %c0_i32_1 = arith.constant 0 : i32
    return %c0_i32, %c0_i32_0 : i32, i32
  }
  func.func @transform_8(%arg0: i32) -> (i32, i32) {
    %c0_i32 = arith.constant 0 : i32
    %c0_i32_0 = arith.constant 0 : i32
    %c0_i32_1 = arith.constant 0 : i32
    return %c0_i32, %c0_i32_0 : i32, i32
  }
}

</mosaic_0001>

<bundles_post_ra>
// kernel: rnn_decoder_decode.1
= control target key start
LH: loop header
LB: loop body
LE: loop exit
PB: predicated region body
PF: predicated region fallthrough
CT: control target
= control target key end

     0   :  { %v3136_v1 = vmov 0   ;;  %v3137_v20 = vmov 0.0   ;;  %vm3138_vm0 = vmmov 0   ;;  %v3139_v52 = vmov 1966171168   ;;  %s4345_s3 = inlined_call_operand.vmem [shape: bf16[128,384], index: 3, kind: input, shape index: {}]   ;;  %s4346_s1 = inlined_call_operand.vmem [shape: f32[8,128], index: 1, kind: input, shape index: {}, may-alias: {1,8}]   ;;  %s4347_s0 = inlined_call_operand.vmem [shape: f32[32,384], index: 0, kind: input, shape index: {}]   ;;  %s4348_s4 = inlined_call_operand.vmem [shape: f32[1,128], index: 4, kind: input, shape index: {}]   ;;  %s4349_s2 = inlined_call_operand.vmem [shape: f32[8,8,128], index: 2, kind: input, shape index: {}]   ;;  %s4350_s8 = inlined_call_operand.vmem [shape: f32[8,128], index: 8, kind: output, shape index: {1}, may-alias: {1,8}]   ;;  %s4351_s5 = inlined_call_operand.vmem [shape: bf16[256,128], index: 5, kind: input, shape index: {}]   ;;  %s4352_s6 = inlined_call_operand.vmem [shape: f32[1,128], index: 6, kind: input, shape index: {}]   ;;  %s4353_s7 = inlined_call_operand.vmem [shape: f32[32,128], index: 7, kind: output, shape index: {0}]  }
   0x1   :  { %v3188_v0 = vld [vmem:[%s4345_s3 + $0xac] ss:$12 sps:$4 sm:$0xff]   ;;  %238 = vmatprep.mubr.bf16.mxu1 %v3136_v1  ;;  %836 = vmatprep.mubr.bf16.mxu0 %v3136_v1  ;;  %v3195_v2 = vld [vmem:[%s4345_s3 + $0xa8] ss:$12 sps:$4 sm:$0xff]   ;;  %v3210_v4 = vld [vmem:[%s4345_s3 + $0x90] ss:$12 sps:$4 sm:$0xff]   ;;  %v318_v53 = vunpack.c.l.s4 %v3139_v52  ;;  %v320_v54 = vlaneseq }
   0x2   :  { %2966 = vset.pattern.permute.xlu1 %v3136_v1  ;;  %2965 = vset.pattern.permute.xlu0 %v3136_v1  ;;  %v3203_v3 = vld [vmem:[%s4345_s3 + $0x94] ss:$12 sps:$4 sm:$0xff]   ;;  %v3217_v5 = vld [vmem:[%s4345_s3 + $0x7c] ss:$12 sps:$4 sm:$0xff]   ;;  %v3224_v6 = vld [vmem:[%s4345_s3 + $0x78] ss:$12 sps:$4 sm:$0xff]  }
   0x3   :  { %206 = vmatprep.subr.bf16.mxu1 %v3188_v0  ;;  %804 = vmatprep.subr.bf16.mxu0 %v3188_v0  ;;  %v3231_v7 = vld [vmem:[%s4345_s3 + $0x64] ss:$12 sps:$4 sm:$0xff]   ;;  %v3238_v8 = vld [vmem:[%s4345_s3 + $0x60] ss:$12 sps:$4 sm:$0xff]   ;;  %v3252_v10 = vld [vmem:[%s4345_s3 + $0x48] ss:$12 sps:$4 sm:$0xff]   ;;  %v319_v56 = vunpack.c.0.s8 %v318_v53 }
   0x4   :  { %207 = vmatpush1.bf16.msra.mxu1 %v3195_v2  ;;  %805 = vmatpush1.bf16.msra.mxu0 %v3195_v2  ;;  %v3245_v9 = vld [vmem:[%s4345_s3 + $0x4c] ss:$12 sps:$4 sm:$0xff]   ;;  %v3259_v11 = vld [vmem:[%s4345_s3 + $0x34] ss:$12 sps:$4 sm:$0xff]   ;;  %v3266_v12 = vld [vmem:[%s4345_s3 + $0x30] ss:$12 sps:$4 sm:$0xff]  }
   0x5   :  { %208 = vmatprep.subr.bf16.mxu1 %v3203_v3  ;;  %806 = vmatprep.subr.bf16.mxu0 %v3203_v3  ;;  %v3273_v13 = vld [vmem:[%s4345_s3 + $0x1c] ss:$12 sps:$4 sm:$0xff]   ;;  %v3280_v14 = vld [vmem:[%s4345_s3 + $0x18] ss:$12 sps:$4 sm:$0xff]   ;;  %v3294_v16 = vld [vmem:[%s4345_s3] ss:$12 sps:$4 sm:$0xff]  }
   0x6   :  { %v3287_v15 = vld [vmem:[%s4345_s3 + $0x4] ss:$12 sps:$4 sm:$0xff]   ;;  %v3328_v22 = vld [vmem:[%s4345_s3 + $0x80] ss:$12 sps:$4 sm:$0xff]   ;;  %v3335_v23 = vld [vmem:[%s4345_s3 + $0x68] ss:$12 sps:$4 sm:$0xff]  }
   0x7   :  { %v3299_v17 = vld [vmem:[%s4346_s1] sm:$0xff]  ;;  %v3310_v19 = vld [vmem:[%s4345_s3 + $0xb0] ss:$12 sps:$4 sm:$0xff]   ;;  %v3363_v27 = vld [vmem:[%s4345_s3 + $0x8] ss:$12 sps:$4 sm:$0xff]   ;;  %v3402_v57 = vshrl.u32 %v320_v54, 7 }
   0x8   :  { %209 = vmatpush1.bf16.msra.mxu1 %v3210_v4  ;;  %807 = vmatpush1.bf16.msra.mxu0 %v3210_v4  ;;  %v77_v18 = vpack.c.bf16 %v3299_v17, %v3299_v17  ;;  %v3319_v21 = vld [vmem:[%s4345_s3 + $0x98] ss:$12 sps:$4 sm:$0xff]   ;;  %v3342_v24 = vld [vmem:[%s4345_s3 + $0x50] ss:$12 sps:$4 sm:$0xff]   ;;  %v3356_v26 = vld [vmem:[%s4345_s3 + $0x20] ss:$12 sps:$4 sm:$0xff]  }
   0x9   :  { %210 = vmatprep.subr.bf16.mxu1 %v3217_v5  ;;  %808 = vmatprep.subr.bf16.mxu0 %v3217_v5  ;;  %v3349_v25 = vld [vmem:[%s4345_s3 + $0x38] ss:$12 sps:$4 sm:$0xff]   ;;  %v75_v33 = vld [vmem:[%s4347_s0 + $0x8] sm:$0xff]  ;;  %v3395_v41 = vld [vmem:[%s4348_s4] ss:$0 sm:$0xff]  ;;  %v3406_v62 = vsub.s32 %v319_v56, %v3402_v57  ;;  %vm471_vm1 = vcmask 1041409  }
   0xa   :  { %v74_v28 = vld [vmem:[%s4347_s0] sm:$0xff]  ;;  %v76_v46 = vld [vmem:[%s4347_s0 + $0x10] sm:$0xff]  ;;  %v3475_v53 = vld [vmem:[%s4349_s2 + $0x18] sm:$0xff]  ;;  %vm473_vm2 = vcmask 1042434   ;;  %vm475_vm3 = vcmask 1043459   ;;  %vm477_vm4 = vcmask 1044484  }
   0xb   :  { %vm479_vm5 = vcmask 1045509   ;;  %vm481_vm6 = vcmask 1046534   ;;  %vm483_vm7 = vcmask 1047559   ;;  %vm486_vm8 = vcmask 64512  }
   0xc   :  { %211 = vmatpush1.bf16.msra.mxu1 %v3224_v6  ;;  %809 = vmatpush1.bf16.msra.mxu0 %v3224_v6 }
   0xd   :  { %212 = vmatprep.subr.bf16.mxu1 %v3231_v7  ;;  %810 = vmatprep.subr.bf16.mxu0 %v3231_v7 }
  0x10   :  { %213 = vmatpush1.bf16.msra.mxu1 %v3238_v8  ;;  %811 = vmatpush1.bf16.msra.mxu0 %v3238_v8 }
  0x11   :  { %214 = vmatprep.subr.bf16.mxu1 %v3245_v9  ;;  %812 = vmatprep.subr.bf16.mxu0 %v3245_v9 }
  0x14   :  { %215 = vmatpush1.bf16.msra.mxu1 %v3252_v10  ;;  %813 = vmatpush1.bf16.msra.mxu0 %v3252_v10 }
  0x15   :  { %216 = vmatprep.subr.bf16.mxu1 %v3259_v11  ;;  %814 = vmatprep.subr.bf16.mxu0 %v3259_v11 }
  0x18   :  { %217 = vmatpush1.bf16.msra.mxu1 %v3266_v12  ;;  %815 = vmatpush1.bf16.msra.mxu0 %v3266_v12 }
  0x19   :  { %218 = vmatprep.subr.bf16.mxu1 %v3273_v13  ;;  %816 = vmatprep.subr.bf16.mxu0 %v3273_v13 }
  0x1c   :  { %219 = vmatpush1.bf16.msra.mxu1 %v3280_v14  ;;  %817 = vmatpush1.bf16.msra.mxu0 %v3280_v14 }
  0x1d   :  { %220 = vmatprep.subr.bf16.mxu1 %v3287_v15  ;;  %818 = vmatprep.subr.bf16.mxu0 %v3287_v15 }
  0x20   :  { %221 = vmatpush1.bf16.msra.mxu1 %v3294_v16  ;;  %819 = vmatpush1.bf16.msra.mxu0 %v3294_v16 }
  0x21   :  { %2881 = vmatprep.subr.bf16.mxu1 %v3137_v20  ;;  %1386 = vmatprep.subr.bf16.mxu0 %v3188_v0 }
  0x23   :  { %239 = vmatmul.mubr.bf16.vlgmr.msra.gmra.mxu1 %v77_v18 }
  0x24   :  { %2882 = vmatpush3.bf16.msra.mxu1 %v3310_v19  ;;  %2897 = vmatprep.mubr.msk.bf16.mxu1 %vm3138_vm0, %v3137_v20 }
  0x25   :  { %2883 = vmatprep.subr.bf16.mxu1 %v3137_v20 }
  0x28   :  { %2884 = vmatpush3.bf16.msra.mxu1 %v3319_v21 }
  0x29   :  { %2885 = vmatprep.subr.bf16.mxu1 %v3137_v20 }
  0x2c   :  { %2886 = vmatpush3.bf16.msra.mxu1 %v3328_v22 }
  0x2d   :  { %2887 = vmatprep.subr.bf16.mxu1 %v3137_v20 }
  0x30   :  { %2888 = vmatpush3.bf16.msra.mxu1 %v3335_v23 }
  0x31   :  { %2889 = vmatprep.subr.bf16.mxu1 %v3137_v20 }
  0x34   :  { %2890 = vmatpush3.bf16.msra.mxu1 %v3342_v24 }
  0x35   :  { %2891 = vmatprep.subr.bf16.mxu1 %v3137_v20 }
  0x38   :  { %2892 = vmatpush3.bf16.msra.mxu1 %v3349_v25 }
  0x39   :  { %2893 = vmatprep.subr.bf16.mxu1 %v3137_v20 }
  0x3c   :  { %2894 = vmatpush3.bf16.msra.mxu1 %v3356_v26 }
  0x3d   :  { %2895 = vmatprep.subr.bf16.mxu1 %v3137_v20 }
  0x40   :  { %2896 = vmatpush3.bf16.msra.mxu1 %v3363_v27 }
  0x41   :  { %2901 = vmatprep.subr.bf16.mxu1 %v3137_v20 }
  0x43   :  { %2898 = vmatmul.mubr.bf16.vlgmr.msra.gmra.mxu1 %v77_v18 }
  0x44   :  { %2902 = vmatpush3.bf16.msra.mxu1 %v3310_v19  ;;  %2917 = vmatprep.mubr.msk.bf16.mxu1 %vm3138_vm0, %v3137_v20 }
  0x45   :  { %2903 = vmatprep.subr.bf16.mxu1 %v3137_v20 }
  0x48   :  { %2904 = vmatpush3.bf16.msra.mxu1 %v3319_v21 }
  0x49   :  { %2905 = vmatprep.subr.bf16.mxu1 %v3137_v20 }
  0x4c   :  { %2906 = vmatpush3.bf16.msra.mxu1 %v3328_v22 }
  0x4d   :  { %2907 = vmatprep.subr.bf16.mxu1 %v3137_v20 }
  0x50   :  { %2908 = vmatpush3.bf16.msra.mxu1 %v3335_v23 }
  0x51   :  { %2909 = vmatprep.subr.bf16.mxu1 %v3137_v20 }
  0x54   :  { %2910 = vmatpush3.bf16.msra.mxu1 %v3342_v24 }
  0x55   :  { %2911 = vmatprep.subr.bf16.mxu1 %v3137_v20 }
  0x58   :  { %2912 = vmatpush3.bf16.msra.mxu1 %v3349_v25 }
  0x59   :  { %2913 = vmatprep.subr.bf16.mxu1 %v3137_v20 }
  0x5c   :  { %2914 = vmatpush3.bf16.msra.mxu1 %v3356_v26 }
  0x5d   :  { %2915 = vmatprep.subr.bf16.mxu1 %v3137_v20 }
  0x60   :  { %2916 = vmatpush3.bf16.msra.mxu1 %v3363_v27 }
  0x61   :  { %2921 = vmatprep.subr.bf16.mxu1 %v3137_v20 }
  0xe3   :  { %v240_v29 = vpop.f32.mrf.mxu1 }
  0xe4   :  { %v287_v30 = vadd.f32 %v240_v29, %v74_v28  ;;  %v3415_v29 = vsub.s32 0, %v3402_v57 }
  0xe5   :  { %v242_v31 = vpop.f32.mrf.mxu1 }
  0xe6   :  { %v2782_v32 = vmul.f32 -1.442695, %v287_v30  ;;  %v294_v36 = vadd.f32 %v242_v31, %v75_v33 }
  0xe7   :  { %v244_v34 = vpop.f32.mrf.mxu1 }
  0xe8   :  { %3015 = vpow2.f32 %v2782_v32  ;;  %v2783_v37 = vmul.f32 -1.442695, %v294_v36  ;;  %v3423_v32 = vld [vmem:[%s4349_s2] sm:$0xff] }
  0xe9   :  { %v245_v35 = vpop.f32.mrf.mxu1 }
  0xea   :  { %3017 = vpow2.f32 %v2783_v37 }
  0xf5   :  { %v3016_v38 = vpop.eup %3015 }
  0xf6   :  { %v291_v39 = vadd.f32 1.0, %v3016_v38 }
  0xf7   :  { %v3018_v40 = vpop.eup %3017 }
  0xf8   :  { %3019 = vrcp.f32 %v291_v39  ;;  %v298_v42 = vadd.f32 1.0, %v3018_v40  ;;  %v3440_v39 = vld [vmem:[%s4349_s2 + $0x8] sm:$0xff] }
  0xfa   :  { %3021 = vrcp.f32 %v298_v42 }
 0x103   :  { %v281_v43 = vpop.f32.mrf.mxu1 }
 0x104   :  { %v307_v44 = vadd.f32 %v3395_v41, %v281_v43 }
 0x105   :  { %v3020_v45 = vpop.eup %3019  ;;  %v2899_v47 = vpop.f32.mrf.mxu1 }
 0x106   :  { %v308_v48 = vmul.f32 %v3020_v45, %v307_v44  ;;  %v3452_v44 = vld [vmem:[%s4349_s2 + $0x10] sm:$0xff] }
 0x107   :  { %v284_v49 = vpop.f32.mrf.mxu1  ;;  %v3022_v55 = vpop.eup %3021 }
 0x108   :  { %v309_v50 = vadd.f32 %v308_v48, %v76_v46  ;;  %v311_v58 = vsub.f32 1.0, %v3022_v55  ;;  %v313_v61 = vmul.f32 %v3022_v55, %v3299_v17  ;;  %v3463_v49 = vld [vmem:[%s4349_s2 + $0x20] sm:$0xff] }
 0x109   :  { %v2900_v51 = vpop.f32.mrf.mxu1 }
 0x10a   :  { %3023 = vtanh.f32 %v309_v50 }
 0x117   :  { %v3024_v59 = vpop.eup %3023 }
 0x118   :  { %v312_v60 = vmul.f32 %v3024_v59, %v311_v58  ;;  %v3486_v59 = vld [vmem:[%s4349_s2 + $0x28] sm:$0xff] }
 0x11a   :  { %v3408_v63 = vadd.f32 %v313_v61, %v312_v60 }
 0x11c   :  { %v803_v18 = vpack.c.bf16 %v3408_v63, %v3408_v63  ;;  %v323_v28 = vrot.slane %v3408_v63, %v3406_v62  ;;  %v316_v17 = vcombine.high %v3408_v63, %v3408_v63 }
 0x11e   :  { %837 = vmatmul.mubr.bf16.vlgmr.msra.gmra.mxu0 %v803_v18  ;;  %2918 = vmatmul.mubr.bf16.vlgmr.msra.gmra.mxu1 %v803_v18  ;;  %v339_v30 = vrot.slane %v323_v28, %v3406_v62  ;;  %v331_v31 = vcombine.high %v323_v28, %v323_v28  ;;  %v330_v38 = vrot.slane %v316_v17, %v3406_v62  ;;  %v3497_v28 = vld [vmem:[%s4349_s2 + $0x30] sm:$0xff]  ;;  %v3508_v17 = vld [vmem:[%s4349_s2 + $0x38] sm:$0xff] }
 0x11f   :  { %1387 = vmatpush1.bf16.msra.mxu0 %v3195_v2  ;;  %2922 = vmatpush3.bf16.msra.mxu1 %v3310_v19 }
 0x120   :  { %v368_v33 = vrot.slane %v339_v30, %v3415_v29  ;;  %v353_v34 = vrot.slane %v331_v31, %v3406_v62  ;;  %1388 = vmatprep.subr.bf16.mxu0 %v3203_v3  ;;  %2923 = vmatprep.subr.bf16.mxu1 %v3137_v20  ;;  %v361_v37 = vcombine.high %v339_v30, %v339_v30 }
 0x121   :  { %1418 = vmatprep.mubr.bf16.mxu0 %v3136_v1  ;;  %2937 = vmatprep.mubr.msk.bf16.mxu1 %vm3138_vm0, %v3137_v20  ;;  %v346_v43 = vrot.slane %v330_v38, %v3406_v62  ;;  %v332_v48 = vcombine.high %v330_v38, %v330_v38 }
 0x122   :  { %v405_v35 = vmul.f32 %v368_v33, %v3423_v32  ;;  %v372_v36 = vrot.slane %v353_v34, %v3415_v29  ;;  %v376_v42 = vrot.slane %v361_v37, %v3415_v29  ;;  %v363_v47 = vcombine.high %v353_v34, %v353_v34  ;;  %v2785_v34 = vld [vmem:[%s4347_s0 + $0x18] sm:$0xff] }
 0x123   :  { %1389 = vmatpush1.bf16.msra.mxu0 %v3210_v4  ;;  %2924 = vmatpush3.bf16.msra.mxu1 %v3319_v21  ;;  %v384_v46 = vrot.slane %v346_v43, %v3415_v29  ;;  %v360_v52 = vrot.slane %v332_v48, %v3406_v62  ;;  %v362_v58 = vcombine.high %v346_v43, %v346_v43  ;;  %v2786_v43 = vld [vmem:[%s4347_s0 + $0x20] sm:$0xff] }
 0x124   :  { %413 = vadd.xlane.f32.xlu0 %v405_v35  ;;  %1390 = vmatprep.subr.bf16.mxu0 %v3217_v5  ;;  %v406_v40 = vmul.f32 %v372_v36, %v3440_v39  ;;  %v407_v45 = vmul.f32 %v376_v42, %v3452_v44  ;;  %v380_v51 = vrot.slane %v363_v47, %v3415_v29 }
 0x125   :  { %2925 = vmatprep.subr.bf16.mxu1 %v3137_v20  ;;  %v409_v50 = vmul.f32 %v384_v46, %v3463_v49  ;;  %v388_v56 = vrot.slane %v360_v52, %v3415_v29  ;;  %v392_v61 = vrot.slane %v362_v58, %v3415_v29  ;;  %v364_v18 = vcombine.high %v360_v52, %v360_v52 }
 0x126   :  { %v408_v55 = vmul.f32 %v380_v51, %v3475_v53 }
 0x127   :  { %1391 = vmatpush1.bf16.msra.mxu0 %v3224_v6  ;;  %2926 = vmatpush3.bf16.msra.mxu1 %v3328_v22  ;;  %v410_v60 = vmul.f32 %v388_v56, %v3486_v59  ;;  %v411_v30 = vmul.f32 %v392_v61, %v3497_v28  ;;  %v396_v31 = vrot.slane %v364_v18, %v3415_v29  ;;  %v2787_v61 = vld [vmem:[%s4347_s0 + $0x28] sm:$0xff] }
 0x128   :  { %415 = vadd.xlane.f32.xlu0 %v406_v40  ;;  %1392 = vmatprep.subr.bf16.mxu0 %v3231_v7 }
 0x129   :  { %2927 = vmatprep.subr.bf16.mxu1 %v3137_v20  ;;  %v412_v33 = vmul.f32 %v396_v31, %v3508_v17 }
 0x12b   :  { %1393 = vmatpush1.bf16.msra.mxu0 %v3238_v8  ;;  %2928 = vmatpush3.bf16.msra.mxu1 %v3335_v23 }
 0x12c   :  { %417 = vadd.xlane.f32.xlu0 %v407_v45  ;;  %1394 = vmatprep.subr.bf16.mxu0 %v3245_v9 }
 0x12d   :  { %2929 = vmatprep.subr.bf16.mxu1 %v3137_v20 }
 0x12f   :  { %1395 = vmatpush1.bf16.msra.mxu0 %v3252_v10  ;;  %2930 = vmatpush3.bf16.msra.mxu1 %v3342_v24 }
 0x130   :  { %421 = vadd.xlane.f32.xlu0 %v409_v50  ;;  %1396 = vmatprep.subr.bf16.mxu0 %v3259_v11 }
 0x131   :  { %2931 = vmatprep.subr.bf16.mxu1 %v3137_v20 }
 0x133   :  { %1397 = vmatpush1.bf16.msra.mxu0 %v3266_v12  ;;  %2932 = vmatpush3.bf16.msra.mxu1 %v3349_v25 }
 0x134   :  { %419 = vadd.xlane.f32.xlu0 %v408_v55  ;;  %1398 = vmatprep.subr.bf16.mxu0 %v3273_v13 }
 0x135   :  { %2933 = vmatprep.subr.bf16.mxu1 %v3137_v20 }
 0x137   :  { %1399 = vmatpush1.bf16.msra.mxu0 %v3280_v14  ;;  %2934 = vmatpush3.bf16.msra.mxu1 %v3356_v26 }
 0x138   :  { %423 = vadd.xlane.f32.xlu0 %v410_v60  ;;  %1400 = vmatprep.subr.bf16.mxu0 %v3287_v15 }
 0x139   :  { %2935 = vmatprep.subr.bf16.mxu1 %v3137_v20 }
 0x13b   :  { %1401 = vmatpush1.bf16.msra.mxu0 %v3294_v16  ;;  %2936 = vmatpush3.bf16.msra.mxu1 %v3363_v27 }
 0x13c   :  { %425 = vadd.xlane.f32.xlu0 %v411_v30  ;;  %1968 = vmatprep.subr.bf16.mxu0 %v3188_v0 }
 0x13d   :  { %2941 = vmatprep.subr.bf16.mxu1 %v3137_v20 }
 0x140   :  { %427 = vadd.xlane.f32.xlu0 %v412_v33 }
 0x1de   :  { %v838_v35 = vpop.f32.mrf.mxu0  ;;  %v879_v36 = vpop.f32.mrf.mxu1 }
 0x1df   :  { %v885_v37 = vadd.f32 %v2785_v34, %v838_v35  ;;  %v899_v58 = vadd.f32 %v3395_v41, %v879_v36 }
 0x1e0   :  { %v840_v38 = vpop.f32.mrf.mxu0  ;;  %v2919_v40 = vpop.f32.mrf.mxu1 }
 0x1e1   :  { %v2788_v42 = vmul.f32 -1.442695, %v885_v37  ;;  %v892_v48 = vadd.f32 %v2786_v43, %v840_v38 }
 0x1e2   :  { %v842_v0 = vpop.f32.mrf.mxu0  ;;  %v882_v45 = vpop.f32.mrf.mxu1 }
 0x1e3   :  { %3025 = vpow2.f32 %v2788_v42  ;;  %v2789_v50 = vmul.f32 -1.442695, %v892_v48 }
 0x1e4   :  { %v843_v46 = vpop.f32.mrf.mxu0  ;;  %v2920_v47 = vpop.f32.mrf.mxu1 }
 0x1e5   :  { %3027 = vpow2.f32 %v2789_v50 }
 0x1f0   :  { %v3026_v51 = vpop.eup %3025 }
 0x1f1   :  { %v889_v52 = vadd.f32 1.0, %v3026_v51 }
 0x1f2   :  { %v3028_v55 = vpop.eup %3027 }
 0x1f3   :  { %3029 = vrcp.f32 %v889_v52  ;;  %v896_v56 = vadd.f32 1.0, %v3028_v55 }
 0x1f5   :  { %3031 = vrcp.f32 %v896_v56 }
 0x200   :  { %v3030_v60 = vpop.eup %3029 }
 0x201   :  { %v900_v18 = vmul.f32 %v3030_v60, %v899_v58 }
 0x202   :  { %v3032_v31 = vpop.eup %3031 }
 0x203   :  { %v901_v30 = vadd.f32 %v2787_v61, %v900_v18  ;;  %v903_v33 = vsub.f32 1.0, %v3032_v31  ;;  %v905_v37 = vmul.f32 %v3032_v31, %v3408_v63 }
 0x205   :  { %3033 = vtanh.f32 %v901_v30 }
 0x212   :  { %v3034_v34 = vpop.eup %3033 }
 0x213   :  { %v904_v35 = vmul.f32 %v3034_v34, %v903_v33 }
 0x215   :  { %v3526_v38 = vadd.f32 %v905_v37, %v904_v35 }
 0x217   :  { %4356 = vst [vmem:[#allocation3_spill] sm:$0xff] %v3526_v38  ;;  %v1385_v36 = vpack.c.bf16 %v3526_v38, %v3526_v38  ;;  %v915_v40 = vrot.slane %v3526_v38, %v3406_v62  ;;  %v908_v0 = vcombine.high %v3526_v38, %v3526_v38 }
 0x219   :  { %1419 = vmatmul.mubr.bf16.vlgmr.msra.gmra.mxu0 %v1385_v36  ;;  %2938 = vmatmul.mubr.bf16.vlgmr.msra.gmra.mxu1 %v1385_v36  ;;  %v931_v42 = vrot.slane %v915_v40, %v3406_v62  ;;  %v923_v43 = vcombine.high %v915_v40, %v915_v40  ;;  %v922_v51 = vrot.slane %v908_v0, %v3406_v62  ;;  %v2792_v40 = vld [vmem:[%s4347_s0 + $0x40] sm:$0xff] }
 0x21a   :  { %1969 = vmatpush1.bf16.msra.mxu0 %v3195_v2  ;;  %2942 = vmatpush3.bf16.msra.mxu1 %v3310_v19 }
 0x21b   :  { %v960_v45 = vrot.slane %v931_v42, %v3415_v29  ;;  %v945_v46 = vrot.slane %v923_v43, %v3406_v62  ;;  %1970 = vmatprep.subr.bf16.mxu0 %v3203_v3  ;;  %2943 = vmatprep.subr.bf16.mxu1 %v3137_v20  ;;  %v953_v50 = vcombine.high %v931_v42, %v931_v42 }
 0x21c   :  { %2000 = vmatprep.mubr.bf16.mxu0 %v3136_v1  ;;  %2957 = vmatprep.mubr.msk.bf16.mxu1 %vm3138_vm0, %v3137_v20  ;;  %v938_v3 = vrot.slane %v922_v51, %v3406_v62 }
 0x21d   :  { %v997_v47 = vmul.f32 %v960_v45, %v3423_v32  ;;  %v964_v48 = vrot.slane %v945_v46, %v3415_v29  ;;  %v968_v2 = vrot.slane %v953_v50, %v3415_v29  ;;  %v955_v19 = vcombine.high %v945_v46, %v945_v46 }
 0x21e   :  { %1971 = vmatpush1.bf16.msra.mxu0 %v3210_v4  ;;  %2944 = vmatpush3.bf16.msra.mxu1 %v3319_v21  ;;  %v924_v21 = vcombine.high %v922_v51, %v922_v51 }
 0x21f   :  { %1005 = vadd.xlane.f32.xlu1 %v997_v47  ;;  %1972 = vmatprep.subr.bf16.mxu0 %v3217_v5  ;;  %v998_v1 = vmul.f32 %v964_v48, %v3440_v39  ;;  %v999_v4 = vmul.f32 %v968_v2, %v3452_v44  ;;  %v976_v5 = vrot.slane %v938_v3, %v3415_v29 }
 0x220   :  { %2945 = vmatprep.subr.bf16.mxu1 %v3137_v20 }
 0x222   :  { %1973 = vmatpush1.bf16.msra.mxu0 %v3224_v6  ;;  %2946 = vmatpush3.bf16.msra.mxu1 %v3328_v22  ;;  %v1001_v6 = vmul.f32 %v976_v5, %v3463_v49  ;;  %v952_v22 = vrot.slane %v924_v21, %v3406_v62 }
 0x223   :  { %1007 = vadd.xlane.f32.xlu1 %v998_v1  ;;  %1974 = vmatprep.subr.bf16.mxu0 %v3231_v7  ;;  %v972_v7 = vrot.slane %v955_v19, %v3415_v29 }
 0x224   :  { %2947 = vmatprep.subr.bf16.mxu1 %v3137_v20 }
 0x226   :  { %1975 = vmatpush1.bf16.msra.mxu0 %v3238_v8  ;;  %2948 = vmatpush3.bf16.msra.mxu1 %v3335_v23  ;;  %v1000_v8 = vmul.f32 %v972_v7, %v3475_v53  ;;  %v954_v23 = vcombine.high %v938_v3, %v938_v3 }
 0x227   :  { %1009 = vadd.xlane.f32.xlu1 %v999_v4  ;;  %1976 = vmatprep.subr.bf16.mxu0 %v3245_v9  ;;  %v980_v9 = vrot.slane %v952_v22, %v3415_v29 }
 0x228   :  { %2949 = vmatprep.subr.bf16.mxu1 %v3137_v20 }
 0x22a   :  { %1977 = vmatpush1.bf16.msra.mxu0 %v3252_v10  ;;  %2950 = vmatpush3.bf16.msra.mxu1 %v3342_v24  ;;  %v1002_v10 = vmul.f32 %v980_v9, %v3486_v59  ;;  %v956_v24 = vcombine.high %v952_v22, %v952_v22 }
 0x22b   :  { %1013 = vadd.xlane.f32.xlu1 %v1001_v6  ;;  %1978 = vmatprep.subr.bf16.mxu0 %v3259_v11  ;;  %v984_v11 = vrot.slane %v954_v23, %v3415_v29 }
 0x22c   :  { %2951 = vmatprep.subr.bf16.mxu1 %v3137_v20 }
 0x22e   :  { %1979 = vmatpush1.bf16.msra.mxu0 %v3266_v12  ;;  %2952 = vmatpush3.bf16.msra.mxu1 %v3349_v25  ;;  %v1003_v12 = vmul.f32 %v984_v11, %v3497_v28 }
 0x22f   :  { %1011 = vadd.xlane.f32.xlu1 %v1000_v8  ;;  %1980 = vmatprep.subr.bf16.mxu0 %v3273_v13  ;;  %v988_v13 = vrot.slane %v956_v24, %v3415_v29 }
 0x230   :  { %2953 = vmatprep.subr.bf16.mxu1 %v3137_v20 }
 0x231   :  { %v1004_v25 = vmul.f32 %v988_v13, %v3508_v17 }
 0x232   :  { %1981 = vmatpush1.bf16.msra.mxu0 %v3280_v14  ;;  %2954 = vmatpush3.bf16.msra.mxu1 %v3356_v26  ;;  %v2790_v14 = vld [vmem:[%s4347_s0 + $0x30] sm:$0xff] }
 0x233   :  { %1015 = vadd.xlane.f32.xlu1 %v1002_v10  ;;  %1982 = vmatprep.subr.bf16.mxu0 %v3287_v15 }
 0x234   :  { %2955 = vmatprep.subr.bf16.mxu1 %v3137_v20 }
 0x236   :  { %1983 = vmatpush1.bf16.msra.mxu0 %v3294_v16  ;;  %2956 = vmatpush3.bf16.msra.mxu1 %v3363_v27  ;;  %v2791_v16 = vld [vmem:[%s4347_s0 + $0x38] sm:$0xff] }
 0x237   :  { %1017 = vadd.xlane.f32.xlu1 %v1003_v12 }
 0x23b   :  { %1019 = vadd.xlane.f32.xlu1 %v1004_v25 }
 0x2d9   :  { %v1420_v26 = vpop.f32.mrf.mxu0  ;;  %v1461_v15 = vpop.f32.mrf.mxu1 }
 0x2da   :  { %v1467_v52 = vadd.f32 %v2790_v14, %v1420_v26  ;;  %v1481_v37 = vadd.f32 %v3395_v41, %v1461_v15 }
 0x2db   :  { %v1422_v20 = vpop.f32.mrf.mxu0  ;;  %v2939_v55 = vpop.f32.mrf.mxu1 }
 0x2dc   :  { %v2793_v56 = vmul.f32 -1.442695, %v1467_v52  ;;  %v1474_v18 = vadd.f32 %v2791_v16, %v1422_v20  ;;  %v2795_v20 = vld [vmem:[%s4347_s0 + $0x48] sm:$0xff] }
 0x2dd   :  { %v1424_v58 = vpop.f32.mrf.mxu0  ;;  %v1464_v60 = vpop.f32.mrf.mxu1 }
 0x2de   :  { %3035 = vpow2.f32 %v2793_v56  ;;  %v2794_v30 = vmul.f32 -1.442695, %v1474_v18 }
 0x2df   :  { %v1425_v27 = vpop.f32.mrf.mxu0  ;;  %v2940_v61 = vpop.f32.mrf.mxu1 }
 0x2e0   :  { %3037 = vpow2.f32 %v2794_v30  ;;  %v2796_v61 = vld [vmem:[%s4347_s0 + $0x50] sm:$0xff] }
 0x2eb   :  { %v3036_v31 = vpop.eup %3035 }
 0x2ec   :  { %v1471_v33 = vadd.f32 1.0, %v3036_v31 }
 0x2ed   :  { %v3038_v34 = vpop.eup %3037 }
 0x2ee   :  { %3039 = vrcp.f32 %v1471_v33  ;;  %v1478_v35 = vadd.f32 1.0, %v3038_v34 }
 0x2f0   :  { %3041 = vrcp.f32 %v1478_v35 }
 0x2fb   :  { %v3040_v36 = vpop.eup %3039 }
 0x2fc   :  { %v1482_v42 = vmul.f32 %v3040_v36, %v1481_v37 }
 0x2fd   :  { %v3042_v0 = vpop.eup %3041 }
 0x2fe   :  { %v1483_v43 = vadd.f32 %v2792_v40, %v1482_v42  ;;  %v1485_v45 = vsub.f32 1.0, %v3042_v0  ;;  %v1487_v48 = vmul.f32 %v3042_v0, %v3526_v38  ;;  %v3636_v40 = vpop.xlane.xlu0 %413 }
 0x300   :  { %3043 = vtanh.f32 %v1483_v43 }
 0x302   :  { %v3638_v43 = vpop.xlane.xlu0 %415 }
 0x30d   :  { %v3044_v46 = vpop.eup %3043 }
 0x30e   :  { %v1486_v47 = vmul.f32 %v3044_v46, %v1485_v45 }
 0x310   :  { %v3599_v50 = vadd.f32 %v1487_v48, %v1486_v47  ;;  %v2797_v47 = vld [vmem:[%s4347_s0 + $0x58] sm:$0xff]  ;;  %v3644_v48 = vpop.xlane.xlu0 %417 }
 0x312   :  { %4357 = vst [vmem:[#allocation4_spill] sm:$0xff] %v3599_v50  ;;  %v1967_v51 = vpack.c.bf16 %v3599_v50, %v3599_v50  ;;  %v1497_v1 = vrot.slane %v3599_v50, %v3406_v62  ;;  %v1490_v2 = vcombine.high %v3599_v50, %v3599_v50 }
 0x314   :  { %2001 = vmatmul.mubr.bf16.vlgmr.msra.gmra.mxu0 %v1967_v51  ;;  %2958 = vmatmul.mubr.bf16.vlgmr.msra.gmra.mxu1 %v1967_v51  ;;  %v1513_v3 = vrot.slane %v1497_v1, %v3406_v62  ;;  %v1505_v4 = vcombine.high %v1497_v1, %v1497_v1  ;;  %v1504_v5 = vrot.slane %v1490_v2, %v3406_v62  ;;  %v3646_v2 = vpop.xlane.xlu0 %421 }
 0x316   :  { %v1542_v19 = vrot.slane %v1513_v3, %v3415_v29  ;;  %v1527_v21 = vrot.slane %v1505_v4, %v3406_v62  ;;  %v1535_v6 = vcombine.high %v1513_v3, %v1513_v3  ;;  %v3615_v9 = vrot.slane %v1504_v5, %v3406_v62  ;;  %v3648_v3 = vpop.xlane.xlu1 %1005 }
 0x317   :  { %v1506_v12 = vcombine.high %v1504_v5, %v1504_v5 }
 0x318   :  { %v1579_v7 = vmul.f32 %v1542_v19, %v3423_v32  ;;  %v1546_v22 = vrot.slane %v1527_v21, %v3415_v29  ;;  %v1550_v8 = vrot.slane %v1535_v6, %v3415_v29  ;;  %v1558_v11 = vrot.slane %v3615_v9, %v3415_v29  ;;  %v3650_v4 = vpop.xlane.xlu0 %419 }
 0x319   :  { %v1537_v24 = vcombine.high %v1527_v21, %v1527_v21  ;;  %v3624_v14 = vrot.slane %v1506_v12, %v3406_v62 }
 0x31a   :  { %1587 = vadd.xlane.f32.xlu0 %v1579_v7  ;;  %v1580_v23 = vmul.f32 %v1546_v22, %v3440_v39  ;;  %v1581_v10 = vmul.f32 %v1550_v8, %v3452_v44  ;;  %v1583_v13 = vmul.f32 %v1558_v11, %v3463_v49  ;;  %v3652_v19 = vpop.xlane.xlu1 %1007  ;;  %v438_v8 = vand.u32 127, %v320_v54 }
 0x31b   :  { %v1554_v25 = vrot.slane %v1537_v24, %v3415_v29  ;;  %v1562_v15 = vrot.slane %v3624_v14, %v3415_v29  ;;  %v1536_v54 = vcombine.high %v3615_v9, %v3615_v9 }
 0x31c   :  { %1589 = vadd.xlane.f32.xlu1 %v1580_v23  ;;  %v3654_v6 = vpop.xlane.xlu0 %423  ;;  %v3665_v12 = vsub.s32 %v438_v8, %v3402_v57 }
 0x31d   :  { %v1582_v26 = vmul.f32 %v1554_v25, %v3475_v53  ;;  %v1584_v52 = vmul.f32 %v1562_v15, %v3486_v59 }
 0x31e   :  { %1591 = vadd.xlane.f32.xlu0 %v1581_v10  ;;  %v3658_v23 = vpop.xlane.xlu1 %1009  ;;  %v446_v15 = vrot.slane %v3638_v43, %v3665_v12  ;;  %v450_v9 = vrot.slane %v3644_v48, %v3665_v12 }
 0x322   :  { %1595 = vadd.xlane.f32.xlu0 %v1583_v13  ;;  %v3667_v13 = vpop.xlane.xlu0 %425 }
 0x326   :  { %1593 = vadd.xlane.f32.xlu0 %v1582_v26 }
 0x32a   :  { %1597 = vadd.xlane.f32.xlu0 %v1584_v52  ;;  %v3674_v52 = vpop.xlane.xlu1 %1013 }
 0x3d4   :  { %v2002_v55 = vpop.f32.mrf.mxu0  ;;  %v2043_v56 = vpop.f32.mrf.mxu1 }
 0x3d5   :  { %v2049_v16 = vadd.f32 %v2795_v20, %v2002_v55  ;;  %v2063_v45 = vadd.f32 %v3395_v41, %v2043_v56 }
 0x3d6   :  { %v2004_v58 = vpop.f32.mrf.mxu0  ;;  %v2959_v60 = vpop.f32.mrf.mxu1 }
 0x3d7   :  { %v2798_v27 = vmul.f32 -1.442695, %v2049_v16  ;;  %v2056_v34 = vadd.f32 %v2796_v61, %v2004_v58  ;;  %v442_v58 = vrot.slane %v3636_v40, %v3665_v12  ;;  %v454_v60 = vrot.slane %v3650_v4, %v3665_v12 }
 0x3d8   :  { %v2006_v18 = vpop.f32.mrf.mxu0  ;;  %v2046_v30 = vpop.f32.mrf.mxu1 }
 0x3d9   :  { %3045 = vpow2.f32 %v2798_v27  ;;  %v2799_v35 = vmul.f32 -1.442695, %v2056_v34  ;;  %v1566_v18 = vrot.slane %v1536_v54, %v3415_v29  ;;  %v1538_v30 = vcombine.high %v3624_v14, %v3624_v14 }
 0x3da   :  { %v2007_v31 = vpop.f32.mrf.mxu0  ;;  %v2960_v33 = vpop.f32.mrf.mxu1 }
 0x3db   :  { %3047 = vpow2.f32 %v2799_v35  ;;  %v472_v31 = vsel %vm471_vm1, %v446_v15, %v442_v58  ;;  %v3691_v33 = vpop.xlane.xlu0 %427 }
 0x3e6   :  { %v3046_v37 = vpop.eup %3045 }
 0x3e7   :  { %v2053_v36 = vadd.f32 1.0, %v3046_v37 }
 0x3e8   :  { %v3048_v42 = vpop.eup %3047 }
 0x3e9   :  { %3049 = vrcp.f32 %v2053_v36  ;;  %v2060_v0 = vadd.f32 1.0, %v3048_v42  ;;  %v3697_v36 = vpop.xlane.xlu1 %1011  ;;  %v462_v42 = vrot.slane %v3654_v6, %v3665_v12 }
 0x3eb   :  { %3051 = vrcp.f32 %v2060_v0  ;;  %v1585_v0 = vmul.f32 %v1566_v18, %v3497_v28 }
 0x3ed   :  { %v3715_v8 = vpop.xlane.xlu1 %1015 }
 0x3f6   :  { %v3050_v46 = vpop.eup %3049 }
 0x3f7   :  { %v2064_v51 = vmul.f32 %v3050_v46, %v2063_v45  ;;  %v458_v45 = vrot.slane %v3646_v2, %v3665_v12  ;;  %v466_v46 = vrot.slane %v3667_v13, %v3665_v12 }
 0x3f8   :  { %v3052_v5 = vpop.eup %3051 }
 0x3f9   :  { %v2065_v1 = vadd.f32 %v2797_v47, %v2064_v51  ;;  %v2067_v41 = vsub.f32 1.0, %v3052_v5  ;;  %v2069_v22 = vmul.f32 %v3052_v5, %v3599_v50  ;;  %v470_v47 = vrot.slane %v3691_v33, %v3665_v12 }
 0x3fb   :  { %3053 = vtanh.f32 %v2065_v1 }
 0x408   :  { %v3054_v21 = vpop.eup %3053 }
 0x409   :  { %v2068_v7 = vmul.f32 %v3054_v21, %v2067_v41 }
 0x40b   :  { %v2070_v10 = vadd.f32 %v2069_v22, %v2068_v7 }
 0x40d   :  { %v2079_v11 = vrot.slane %v2070_v10, %v3406_v62  ;;  %2543 = vst [vmem:[%s4350_s8] sm:$0xff] %v2070_v10  ;;  %v2072_v24 = vcombine.high %v2070_v10, %v2070_v10 }
 0x40f   :  { %v2095_v25 = vrot.slane %v2079_v11, %v3406_v62  ;;  %v2087_v26 = vcombine.high %v2079_v11, %v2079_v11  ;;  %v2086_v16 = vrot.slane %v2072_v24, %v3406_v62 }
 0x411   :  { %v2124_v20 = vrot.slane %v2095_v25, %v3415_v29  ;;  %v2109_v55 = vrot.slane %v2087_v26, %v3406_v62  ;;  %v2117_v56 = vcombine.high %v2095_v25, %v2095_v25  ;;  %v2102_v37 = vrot.slane %v2086_v16, %v3406_v62 }
 0x412   :  { %v2088_v41 = vcombine.high %v2086_v16, %v2086_v16  ;;  %v1044_v16 = vrot.slane %v3697_v36, %v3665_v12 }
 0x413   :  { %v2161_v27 = vmul.f32 %v2124_v20, %v3423_v32  ;;  %v2128_v61 = vrot.slane %v2109_v55, %v3415_v29  ;;  %v2132_v35 = vrot.slane %v2117_v56, %v3415_v29  ;;  %v474_v32 = vsel %vm473_vm2, %v450_v9, %v472_v31 }
 0x414   :  { %v476_v14 = vsel %vm475_vm3, %v454_v60, %v474_v32  ;;  %v2140_v1 = vrot.slane %v2102_v37, %v3415_v29  ;;  %v2119_v5 = vcombine.high %v2109_v55, %v2109_v55  ;;  %v2116_v25 = vrot.slane %v2088_v41, %v3406_v62  ;;  %v3725_v55 = vpop.xlane.xlu1 %1017 }
 0x415   :  { %2169 = vadd.xlane.f32.xlu0 %v2161_v27  ;;  %v2162_v34 = vmul.f32 %v2128_v61, %v3440_v39  ;;  %v1570_v39 = vrot.slane %v1538_v30, %v3415_v29  ;;  %v2163_v51 = vmul.f32 %v2132_v35, %v3452_v44  ;;  %v478_v21 = vsel %vm477_vm4, %v458_v45, %v476_v14  ;;  %v3758_v45 = vpop.xlane.xlu0 %1587 }
 0x416   :  { %v480_v22 = vsel %vm479_vm5, %v462_v42, %v478_v21  ;;  %v2165_v44 = vmul.f32 %v2140_v1, %v3463_v49  ;;  %v2136_v24 = vrot.slane %v2119_v5, %v3415_v29  ;;  %v2144_v15 = vrot.slane %v2116_v25, %v3415_v29 }
 0x417   :  { %2171 = vadd.xlane.f32.xlu1 %v2162_v34  ;;  %v1586_v7 = vmul.f32 %v1570_v39, %v3508_v17  ;;  %v482_v10 = vsel %vm481_vm6, %v466_v46, %v480_v22  ;;  %v2118_v20 = vcombine.high %v2102_v37, %v2102_v37  ;;  %v1036_v49 = vrot.slane %v3652_v19, %v3665_v12 }
 0x418   :  { %v484_v11 = vsel %vm483_vm7, %v470_v47, %v482_v10  ;;  %v2164_v54 = vmul.f32 %v2136_v24, %v3475_v53  ;;  %v1032_v56 = vrot.slane %v3648_v3, %v3665_v12  ;;  %v1040_v62 = vrot.slane %v3658_v23, %v3665_v12  ;;  %v3739_v61 = vpop.xlane.xlu1 %1019 }
 0x419   :  { %1599 = vadd.xlane.f32.xlu0 %v1585_v0  ;;  %v487_v26 = vsel %vm486_vm8, %v484_v11, -inf  ;;  %v2166_v53 = vmul.f32 %v2144_v15, %v3486_v59  ;;  %v2148_v58 = vrot.slane %v2118_v20, %v3415_v29  ;;  %v2120_v9 = vcombine.high %v2116_v25, %v2116_v25  ;;  %v3760_v46 = vpop.xlane.xlu0 %1591 }
 0x41a   :  { %v1061_v60 = vsel %vm471_vm1, %v1036_v49, %v1032_v56  ;;  %v1052_v30 = vrot.slane %v3715_v8, %v3665_v12  ;;  %v1048_v59 = vrot.slane %v3674_v52, %v3665_v12  ;;  %v1056_v35 = vrot.slane %v3725_v55, %v3665_v12 }
 0x41b   :  { %2173 = vadd.xlane.f32.xlu1 %v2163_v51  ;;  %v1062_v27 = vsel %vm473_vm2, %v1040_v62, %v1061_v60  ;;  %v2167_v31 = vmul.f32 %v2148_v58, %v3497_v28  ;;  %v2152_v34 = vrot.slane %v2120_v9, %v3415_v29  ;;  %v1060_v37 = vrot.slane %v3739_v61, %v3665_v12 }
 0x41c   :  { %v1063_v18 = vsel %vm475_vm3, %v1044_v16, %v1062_v27  ;;  %v3766_v1 = vpop.xlane.xlu1 %1589  ;;  %v1614_v41 = vrot.slane %v3758_v45, %v3665_v12  ;;  %v1622_v21 = vrot.slane %v3760_v46, %v3665_v12  ;;  %v3801_v16 = vsub.s32 1, %v3402_v57 }
 0x41d   :  { %1601 = vadd.xlane.f32.xlu0 %v1586_v7  ;;  %v1064_v32 = vsel %vm477_vm4, %v1048_v59, %v1063_v18  ;;  %v2168_v14 = vmul.f32 %v2152_v34, %v3508_v17  ;;  %v3762_v47 = vpop.xlane.xlu0 %1595  ;;  %v1618_v5 = vrot.slane %v3766_v1, %v3665_v12  ;;  %v3812_v18 = vsub.s32 3, %v3402_v57 }
 0x41e   :  { %v1065_v42 = vsel %vm479_vm5, %v1052_v30, %v1064_v32 }
 0x41f   :  { %2177 = vadd.xlane.f32.xlu1 %v2165_v44  ;;  %v1066_v28 = vsel %vm481_vm6, %v1056_v35, %v1065_v42  ;;  %v1643_v22 = vsel %vm471_vm1, %v1618_v5, %v1614_v41 }
 0x420   :  { %v1067_v0 = vsel %vm483_vm7, %v1060_v37, %v1066_v28  ;;  %v1644_v11 = vsel %vm473_vm2, %v1622_v21, %v1643_v22 }
 0x421   :  { %488 = vmax.xlane.f32.xlu0 %v487_v26  ;;  %v1069_v39 = vsel %vm486_vm8, %v1067_v0, -inf  ;;  %v3764_v51 = vpop.xlane.xlu0 %1593 }
 0x422   :  { %v1626_v10 = vrot.slane %v3764_v51, %v3665_v12 }
 0x423   :  { %2175 = vadd.xlane.f32.xlu1 %v2164_v54  ;;  %v1630_v54 = vrot.slane %v3762_v47, %v3665_v12 }
 0x424   :  { %v1645_v25 = vsel %vm475_vm3, %v1626_v10, %v1644_v11 }
 0x425   :  { %v3768_v17 = vpop.xlane.xlu0 %1597  ;;  %v1646_v56 = vsel %vm477_vm4, %v1630_v54, %v1645_v25 }
 0x426   :  { %v1634_v26 = vrot.slane %v3768_v17, %v3665_v12 }
 0x427   :  { %2179 = vadd.xlane.f32.xlu1 %v2166_v53  ;;  %v3804_v53 = vsub.s32 2, %v3402_v57 }
 0x428   :  { %v1647_v58 = vsel %vm479_vm5, %v1634_v26, %v1646_v56 }
 0x42b   :  { %2181 = vadd.xlane.f32.xlu1 %v2167_v31 }
 0x42f   :  { %2183 = vadd.xlane.f32.xlu1 %v2168_v14 }
 0x433   :  { %1070 = vmax.xlane.f32.xlu1 %v1069_v39 }
 0x49e   :  { %v3776_v7 = vpop.xlane.xlu0 %2169 }
 0x4a0   :  { %v3781_v44 = vpop.xlane.xlu1 %2171 }
 0x4a2   :  { %v3784_v24 = vpop.xlane.xlu0 %1599 }
 0x4a3   :  { %v1638_v15 = vrot.slane %v3784_v24, %v3665_v12 }
 0x4a4   :  { %v3793_v20 = vpop.xlane.xlu1 %2173 }
 0x4a5   :  { %v1648_v60 = vsel %vm481_vm6, %v1638_v15, %v1647_v58  ;;  %v3857_v58 = vsub.s32 7, %v3402_v57 }
 0x4a6   :  { %v3795_v49 = vpop.xlane.xlu0 %1601 }
 0x4a7   :  { %v1642_v62 = vrot.slane %v3795_v49, %v3665_v12 }
 0x4a8   :  { %v3807_v9 = vpop.xlane.xlu1 %2177 }
 0x4a9   :  { %v1649_v27 = vsel %vm483_vm7, %v1642_v62, %v1648_v60 }
 0x4aa   :  { %v3814_v30 = vpop.xlane.xlu0 %488  ;;  %v1651_v31 = vsel %vm486_vm8, %v1649_v27, -inf }
 0x4ab   :  { %v494_v34 = vrot.slane %v3814_v30, %v3415_v29  ;;  %v498_v59 = vrot.slane %v3814_v30, %v3801_v16  ;;  %v502_v35 = vrot.slane %v3814_v30, %v3804_v53  ;;  %1652 = vmax.xlane.f32.xlu0 %v1651_v31  ;;  %v506_v42 = vrot.slane %v3814_v30, %v3812_v18 }
 0x4ac   :  { %v3823_v37 = vpop.xlane.xlu1 %2175 }
 0x4ad   :  { %v531_v32 = vsub.f32 %v3636_v40, %v494_v34  ;;  %v532_v14 = vsub.f32 %v3638_v43, %v498_v59  ;;  %v533_v28 = vsub.f32 %v3644_v48, %v502_v35  ;;  %v534_v41 = vsub.f32 %v3650_v4, %v506_v42 }
 0x4ae   :  { %v3844_v4 = vsub.s32 5, %v3402_v57 }
 0x4af   :  { %v539_v0 = vmul.f32 1.442695, %v531_v32  ;;  %v541_v39 = vmul.f32 1.442695, %v532_v14  ;;  %v543_v21 = vmul.f32 1.442695, %v533_v28  ;;  %v2204_v28 = vrot.slane %v3793_v20, %v3665_v12 }
 0x4b0   :  { %v3830_v5 = vpop.xlane.xlu1 %2179  ;;  %v545_v40 = vmul.f32 1.442695, %v534_v41  ;;  %v3890_v41 = vsub.s32 4, %v3402_v57 }
 0x4b1   :  { %3055 = vpow2.f32 %v541_v39  ;;  %v2208_v39 = vrot.slane %v3823_v37, %v3665_v12 }
 0x4b2   :  { %3057 = vpow2.f32 %v539_v0  ;;  %v2196_v0 = vrot.slane %v3776_v7, %v3665_v12 }
 0x4b3   :  { %3059 = vpow2.f32 %v543_v21 }
 0x4b4   :  { %v3833_v22 = vpop.xlane.xlu1 %2181  ;;  %3061 = vpow2.f32 %v545_v40 }
 0x4b8   :  { %v3835_v10 = vpop.xlane.xlu1 %2183 }
 0x4bc   :  { %v3837_v43 = vpop.xlane.xlu1 %1070 }
 0x4bd   :  { %v1080_v48 = vrot.slane %v3837_v43, %v3801_v16  ;;  %v1088_v11 = vrot.slane %v3837_v43, %v3812_v18  ;;  %v1096_v15 = vrot.slane %v3837_v43, %v3844_v4 }
 0x4be   :  { %v3846_v25 = vpop.eup %3055 }
 0x4bf   :  { %v1114_v26 = vsub.f32 %v3652_v19, %v1080_v48  ;;  %v3849_v54 = vpop.eup %3057  ;;  %v1116_v56 = vsub.f32 %v3697_v36, %v1088_v11  ;;  %567 = vperm.xlu1 %2966, %v3846_v25   ;;  %v1104_v19 = vrot.slane %v3837_v43, %v3857_v58  ;;  %v1118_v27 = vsub.f32 %v3715_v8, %v1096_v15 }
 0x4c0   :  { %v3859_v60 = vpop.eup %3059  ;;  %v2216_v11 = vrot.slane %v3830_v5, %v3665_v12  ;;  %v510_v15 = vrot.slane %v3814_v30, %v3890_v41 }
 0x4c1   :  { %v1123_v62 = vmul.f32 1.442695, %v1114_v26  ;;  %564 = vperm.xlu0 %2965, %v3849_v54   ;;  %v1127_v31 = vmul.f32 1.442695, %v1116_v56  ;;  %v3865_v36 = vpop.eup %3061  ;;  %v1120_v34 = vsub.f32 %v3739_v61, %v1104_v19  ;;  %v1131_v59 = vmul.f32 1.442695, %v1118_v27 }
 0x4c2   :  { %v2200_v61 = vrot.slane %v3781_v44, %v3665_v12  ;;  %v2212_v26 = vrot.slane %v3807_v9, %v3665_v12  ;;  %v2220_v56 = vrot.slane %v3833_v22, %v3665_v12 }
 0x4c3   :  { %3063 = vpow2.f32 %v1123_v62  ;;  %570 = vperm.xlu1 %2966, %v3859_v60   ;;  %v1135_v35 = vmul.f32 1.442695, %v1120_v34  ;;  %v2224_v62 = vrot.slane %v3835_v10, %v3665_v12  ;;  %v514_v34 = vrot.slane %v3814_v30, %v3844_v4 }
 0x4c4   :  { %3065 = vpow2.f32 %v1127_v31  ;;  %v2225_v21 = vsel %vm471_vm1, %v2200_v61, %v2196_v0  ;;  %v3908_v31 = vsub.s32 6, %v3402_v57  ;;  %v522_v57 = vrot.slane %v3814_v30, %v3857_v58 }
 0x4c5   :  { %3067 = vpow2.f32 %v1131_v59  ;;  %v2226_v40 = vsel %vm473_vm2, %v2204_v28, %v2225_v21  ;;  %v535_v59 = vsub.f32 %v3646_v2, %v510_v15  ;;  %v536_v0 = vsub.f32 %v3654_v6, %v514_v34 }
 0x4c6   :  { %3069 = vpow2.f32 %v1135_v35  ;;  %v2227_v48 = vsel %vm475_vm3, %v2208_v39, %v2226_v40  ;;  %v518_v28 = vrot.slane %v3814_v30, %v3908_v31  ;;  %v1084_v15 = vrot.slane %v3837_v43, %v3804_v53 }
 0x4c7   :  { %573 = vperm.xlu1 %2966, %v3865_v36   ;;  %v2228_v19 = vsel %vm477_vm4, %v2212_v26, %v2227_v48  ;;  %v547_v39 = vmul.f32 1.442695, %v535_v59  ;;  %v549_v2 = vmul.f32 1.442695, %v536_v0  ;;  %v538_v48 = vsub.f32 %v3691_v33, %v522_v57 }
 0x4c8   :  { %v2229_v27 = vsel %vm479_vm5, %v2216_v11, %v2228_v19  ;;  %v537_v40 = vsub.f32 %v3667_v13, %v518_v28  ;;  %v1076_v26 = vrot.slane %v3837_v43, %v3415_v29  ;;  %v1092_v13 = vrot.slane %v3837_v43, %v3890_v41 }
 0x4c9   :  { %v2230_v35 = vsel %vm481_vm6, %v2220_v56, %v2229_v27  ;;  %3071 = vpow2.f32 %v547_v39  ;;  %v553_v6 = vmul.f32 1.442695, %v538_v48  ;;  %v1115_v30 = vsub.f32 %v3658_v23, %v1084_v15 }
 0x4ca   :  { %v2231_v61 = vsel %vm483_vm7, %v2224_v62, %v2230_v35  ;;  %3073 = vpow2.f32 %v549_v2  ;;  %v551_v11 = vmul.f32 1.442695, %v537_v40  ;;  %v1113_v56 = vsub.f32 %v3648_v3, %v1076_v26 }
 0x4cb   :  { %v2233_v21 = vsel %vm486_vm8, %v2231_v61, -inf  ;;  %v1100_v19 = vrot.slane %v3837_v43, %v3908_v31  ;;  %v1117_v27 = vsub.f32 %v3674_v52, %v1092_v13  ;;  %v1125_v34 = vmul.f32 1.442695, %v1115_v30 }
 0x4cc   :  { %3075 = vpow2.f32 %v551_v11  ;;  %v1121_v62 = vmul.f32 1.442695, %v1113_v56 }
 0x4cd   :  { %3077 = vpow2.f32 %v553_v6  ;;  %v1119_v3 = vsub.f32 %v3725_v55, %v1100_v19  ;;  %v1129_v23 = vmul.f32 1.442695, %v1117_v27 }
 0x4ce   :  { %3079 = vpow2.f32 %v1121_v62 }
 0x4cf   :  { %3081 = vpow2.f32 %v1125_v34  ;;  %v1133_v61 = vmul.f32 1.442695, %v1119_v3 }
 0x4d0   :  { %v3869_v32 = vpop.eup %3063  ;;  %3083 = vpow2.f32 %v1129_v23 }
 0x4d1   :  { %1149 = vperm.xlu0 %2965, %v3869_v32   ;;  %v3872_v8 = vpop.eup %3065  ;;  %3085 = vpow2.f32 %v1133_v61 }
 0x4d2   :  { %v3875_v14 = vpop.eup %3067 }
 0x4d3   :  { %v3880_v42 = vpop.eup %3069 }
 0x4d5   :  { %1155 = vperm.xlu0 %2965, %v3872_v8  }
 0x4d6   :  { %v3931_v33 = vpop.eup %3071 }
 0x4d7   :  { %v3937_v59 = vpop.eup %3073 }
 0x4d9   :  { %1161 = vperm.xlu0 %2965, %v3875_v14   ;;  %v3941_v35 = vpop.eup %3075 }
 0x4da   :  { %v3944_v28 = vpop.eup %3077 }
 0x4db   :  { %v3947_v52 = vpop.eup %3079 }
 0x4dc   :  { %v3950_v43 = vpop.eup %3081 }
 0x4dd   :  { %1167 = vperm.xlu0 %2965, %v3880_v42   ;;  %v3953_v55 = vpop.eup %3083 }
 0x4de   :  { %v3956_v0 = vpop.eup %3085 }
 0x4eb   :  { %2234 = vmax.xlane.f32.xlu1 %v2233_v21 }
 0x4fc   :  { %576 = vperm.xlu1 %2966, %v3931_v33  }
 0x500   :  { %579 = vperm.xlu1 %2966, %v3937_v59  }
 0x504   :  { %582 = vperm.xlu1 %2966, %v3941_v35  }
 0x508   :  { %585 = vperm.xlu1 %2966, %v3944_v28  }
 0x50c   :  { %1146 = vperm.xlu1 %2966, %v3947_v52  }
 0x510   :  { %1152 = vperm.xlu1 %2966, %v3950_v43  }
 0x514   :  { %1158 = vperm.xlu1 %2966, %v3953_v55  }
 0x518   :  { %1164 = vperm.xlu1 %2966, %v3956_v0  }
 0x534   :  { %v1653_v39 = vpop.xlane.xlu0 %1652 }
 0x535   :  { %v1658_v21 = vrot.slane %v1653_v39, %v3415_v29  ;;  %v1662_v57 = vrot.slane %v1653_v39, %v3801_v16  ;;  %v1666_v40 = vrot.slane %v1653_v39, %v3804_v53  ;;  %v1670_v2 = vrot.slane %v1653_v39, %v3812_v18 }
 0x536   :  { %v1674_v56 = vrot.slane %v1653_v39, %v3890_v41  ;;  %v1678_v62 = vrot.slane %v1653_v39, %v3844_v4 }
 0x537   :  { %v1695_v48 = vsub.f32 %v3758_v45, %v1658_v21  ;;  %v1696_v11 = vsub.f32 %v3766_v1, %v1662_v57  ;;  %v1697_v26 = vsub.f32 %v3760_v46, %v1666_v40  ;;  %v1698_v13 = vsub.f32 %v3764_v51, %v1670_v2 }
 0x538   :  { %v1699_v19 = vsub.f32 %v3762_v47, %v1674_v56  ;;  %v1700_v45 = vsub.f32 %v3768_v17, %v1678_v62  ;;  %v1682_v40 = vrot.slane %v1653_v39, %v3908_v31 }
 0x539   :  { %v1703_v6 = vmul.f32 1.442695, %v1695_v48  ;;  %v1705_v15 = vmul.f32 1.442695, %v1696_v11  ;;  %v1707_v30 = vmul.f32 1.442695, %v1697_v26 }
 0x53a   :  { %v1709_v27 = vmul.f32 1.442695, %v1698_v13  ;;  %v1711_v1 = vmul.f32 1.442695, %v1699_v19  ;;  %v1713_v46 = vmul.f32 1.442695, %v1700_v45  ;;  %v3989_v61 = vpop.permute.xlu1 %567 }
 0x53b   :  { %3087 = vpow2.f32 %v1703_v6  ;;  %v1686_v6 = vrot.slane %v1653_v39, %v3857_v58 }
 0x53c   :  { %3089 = vpow2.f32 %v1705_v15  ;;  %v1701_v15 = vsub.f32 %v3784_v24, %v1682_v40 }
 0x53d   :  { %3091 = vpow2.f32 %v1707_v30  ;;  %v1702_v45 = vsub.f32 %v3795_v49, %v1686_v6 }
 0x53e   :  { %3093 = vpow2.f32 %v1709_v27  ;;  %v3991_v21 = vpop.permute.xlu1 %570 }
 0x53f   :  { %3095 = vpow2.f32 %v1711_v1  ;;  %v1715_v1 = vmul.f32 1.442695, %v1701_v15 }
 0x540   :  { %3097 = vpow2.f32 %v1713_v46 }
 0x542   :  { %v3993_v57 = vpop.permute.xlu1 %573 }
 0x548   :  { %v3971_v34 = vpop.eup %3087 }
 0x549   :  { %v3973_v3 = vpop.eup %3089  ;;  %1728 = vperm.xlu1 %2966, %v3971_v34  }
 0x54a   :  { %1731 = vperm.xlu0 %2965, %v3973_v3   ;;  %v3977_v51 = vpop.eup %3091 }
 0x54b   :  { %v3980_v47 = vpop.eup %3093 }
 0x54c   :  { %v3983_v17 = vpop.eup %3095 }
 0x54d   :  { %1734 = vperm.xlu1 %2966, %v3977_v51   ;;  %v3986_v23 = vpop.eup %3097 }
 0x551   :  { %1737 = vperm.xlu1 %2966, %v3980_v47  }
 0x555   :  { %1740 = vperm.xlu1 %2966, %v3983_v17  }
 0x559   :  { %1743 = vperm.xlu1 %2966, %v3986_v23  }
 0x574   :  { %v2235_v2 = vpop.xlane.xlu1 %2234 }
 0x575   :  { %v2240_v48 = vrot.slane %v2235_v2, %v3415_v29  ;;  %v2244_v11 = vrot.slane %v2235_v2, %v3801_v16  ;;  %v2248_v26 = vrot.slane %v2235_v2, %v3804_v53  ;;  %v2252_v30 = vrot.slane %v2235_v2, %v3812_v18 }
 0x576   :  { %v2256_v46 = vrot.slane %v2235_v2, %v3890_v41 }
 0x577   :  { %v2277_v56 = vsub.f32 %v3776_v7, %v2240_v48  ;;  %v2278_v13 = vsub.f32 %v3781_v44, %v2244_v11  ;;  %v2279_v62 = vsub.f32 %v3793_v20, %v2248_v26  ;;  %v2280_v39 = vsub.f32 %v3823_v37, %v2252_v30 }
 0x578   :  { %v1717_v7 = vmul.f32 1.442695, %v1702_v45  ;;  %v2260_v44 = vrot.slane %v2235_v2, %v3844_v4  ;;  %v2281_v40 = vsub.f32 %v3807_v9, %v2256_v46  ;;  %v2264_v48 = vrot.slane %v2235_v2, %v3908_v31  ;;  %v577_v9 = vpop.permute.xlu1 %576 }
 0x579   :  { %v2285_v19 = vmul.f32 1.442695, %v2277_v56  ;;  %v2287_v27 = vmul.f32 1.442695, %v2278_v13  ;;  %v2289_v24 = vmul.f32 1.442695, %v2279_v62  ;;  %v2268_v37 = vrot.slane %v2235_v2, %v3857_v58 }
 0x57a   :  { %v2291_v20 = vmul.f32 1.442695, %v2280_v39  ;;  %v2282_v49 = vsub.f32 %v3830_v5, %v2260_v44  ;;  %v2293_v11 = vmul.f32 1.442695, %v2281_v40  ;;  %v2283_v6 = vsub.f32 %v3833_v22, %v2264_v48  ;;  %v565_v44 = vpop.permute.xlu0 %564 }
 0x57b   :  { %3099 = vpow2.f32 %v2285_v19  ;;  %v2284_v5 = vsub.f32 %v3835_v10, %v2268_v37  ;;  %v590_v40 = vrot.slane %v565_v44, %v3665_v12  ;;  %v594_v48 = vrot.slane %v3989_v61, %v3665_v12 }
 0x57c   :  { %3101 = vpow2.f32 %v2287_v27  ;;  %v2295_v15 = vmul.f32 1.442695, %v2282_v49  ;;  %v2297_v30 = vmul.f32 1.442695, %v2283_v6  ;;  %v580_v22 = vpop.permute.xlu1 %579  ;;  %v602_v6 = vrot.slane %v3993_v57, %v3665_v12 }
 0x57d   :  { %3103 = vpow2.f32 %v1715_v1  ;;  %v2299_v19 = vmul.f32 1.442695, %v2284_v5  ;;  %v619_v37 = vsel %vm471_vm1, %v594_v48, %v590_v40  ;;  %v610_v5 = vrot.slane %v580_v22, %v3665_v12 }
 0x57e   :  { %3105 = vpow2.f32 %v2289_v24 }
 0x57f   :  { %3107 = vpow2.f32 %v1717_v7 }
 0x580   :  { %3109 = vpow2.f32 %v2291_v20  ;;  %v583_v45 = vpop.permute.xlu1 %582  ;;  %v1150_v20 = vpop.permute.xlu0 %1149 }
 0x581   :  { %3111 = vpow2.f32 %v2293_v11  ;;  %v598_v11 = vrot.slane %v3991_v21, %v3665_v12  ;;  %v614_v44 = vrot.slane %v583_v45, %v3665_v12 }
 0x582   :  { %3113 = vpow2.f32 %v2295_v15  ;;  %v606_v15 = vrot.slane %v577_v9, %v3665_v12  ;;  %v1176_v9 = vrot.slane %v1150_v20, %v3665_v12 }
 0x583   :  { %3115 = vpow2.f32 %v2297_v30  ;;  %v620_v30 = vsel %vm473_vm2, %v598_v11, %v619_v37 }
 0x584   :  { %3117 = vpow2.f32 %v2299_v19  ;;  %v586_v46 = vpop.permute.xlu1 %585  ;;  %v1156_v19 = vpop.permute.xlu0 %1155  ;;  %v621_v61 = vsel %vm475_vm3, %v602_v6, %v620_v30 }
 0x585   :  { %v618_v50 = vrot.slane %v586_v46, %v3665_v12  ;;  %v622_v40 = vsel %vm477_vm4, %v606_v15, %v621_v61  ;;  %v1184_v6 = vrot.slane %v1156_v19, %v3665_v12 }
 0x586   :  { %v623_v22 = vsel %vm479_vm5, %v610_v5, %v622_v40 }
 0x587   :  { %v624_v48 = vsel %vm481_vm6, %v614_v44, %v623_v22 }
 0x588   :  { %v4012_v26 = vpop.eup %3099  ;;  %v1147_v7 = vpop.permute.xlu1 %1146  ;;  %v625_v45 = vsel %vm483_vm7, %v618_v50, %v624_v48 }
 0x589   :  { %v4016_v56 = vpop.eup %3101  ;;  %2310 = vperm.xlu1 %2966, %v4012_v26   ;;  %v1172_v21 = vrot.slane %v1147_v7, %v3665_v12  ;;  %v1162_v37 = vpop.permute.xlu0 %1161 }
 0x58a   :  { %2313 = vperm.xlu0 %2965, %v4016_v56   ;;  %v4020_v13 = vpop.eup %3103  ;;  %v1192_v44 = vrot.slane %v1162_v37, %v3665_v12 }
 0x58b   :  { %v4023_v62 = vpop.eup %3105  ;;  %v1201_v11 = vsel %vm471_vm1, %v1176_v9, %v1172_v21 }
 0x58c   :  { %v4027_v2 = vpop.eup %3107  ;;  %v1153_v49 = vpop.permute.xlu1 %1152 }
 0x58d   :  { %1746 = vperm.xlu1 %2966, %v4020_v13   ;;  %v4029_v27 = vpop.eup %3109  ;;  %v1180_v57 = vrot.slane %v1153_v49, %v3665_v12  ;;  %v627_v49 = vsel %vm486_vm8, %v625_v45, 0.0  ;;  %v1168_v50 = vpop.permute.xlu0 %1167 }
 0x58e   :  { %2316 = vperm.xlu0 %2965, %v4023_v62   ;;  %v4033_v10 = vpop.eup %3111 }
 0x58f   :  { %v4036_v1 = vpop.eup %3113  ;;  %v1202_v46 = vsel %vm473_vm2, %v1180_v57, %v1201_v11 }
 0x590   :  { %v4039_v39 = vpop.eup %3115  ;;  %v1159_v38 = vpop.permute.xlu1 %1158  ;;  %v1203_v20 = vsel %vm475_vm3, %v1184_v6, %v1202_v46 }
 0x591   :  { %1749 = vperm.xlu1 %2966, %v4027_v2   ;;  %v4042_v24 = vpop.eup %3117  ;;  %v1188_v7 = vrot.slane %v1159_v38, %v3665_v12  ;;  %v1200_v38 = vrot.slane %v1168_v50, %v3665_v12 }
 0x592   :  { %2319 = vperm.xlu0 %2965, %v4029_v27  }
 0x593   :  { %v1204_v5 = vsel %vm477_vm4, %v1188_v7, %v1203_v20 }
 0x594   :  { %v1165_v15 = vpop.permute.xlu1 %1164  ;;  %v1205_v61 = vsel %vm479_vm5, %v1192_v44, %v1204_v5 }
 0x595   :  { %v1196_v30 = vrot.slane %v1165_v15, %v3665_v12 }
 0x596   :  { %2322 = vperm.xlu0 %2965, %v4033_v10  }
 0x597   :  { %v1206_v21 = vsel %vm481_vm6, %v1196_v30, %v1205_v61 }
 0x598   :  { %v1207_v19 = vsel %vm483_vm7, %v1200_v38, %v1206_v21 }
 0x599   :  { %v1209_v40 = vsel %vm486_vm8, %v1207_v19, 0.0 }
 0x59a   :  { %2325 = vperm.xlu0 %2965, %v4036_v1  }
 0x59e   :  { %2328 = vperm.xlu0 %2965, %v4039_v39  }
 0x5a2   :  { %2331 = vperm.xlu0 %2965, %v4042_v24  }
 0x5b5   :  { %628 = vadd.xlane.f32.xlu1 %v627_v49 }
 0x5c1   :  { %1210 = vadd.xlane.f32.xlu0 %v1209_v40 }
 0x5c4   :  { %v1729_v57 = vpop.permute.xlu1 %1728 }
 0x5c5   :  { %v1732_v45 = vpop.permute.xlu0 %1731  ;;  %v1754_v37 = vrot.slane %v1729_v57, %v3665_v12 }
 0x5c6   :  { %v1758_v7 = vrot.slane %v1732_v45, %v3665_v12 }
 0x5c8   :  { %v1735_v9 = vpop.permute.xlu1 %1734  ;;  %v1783_v30 = vsel %vm471_vm1, %v1758_v7, %v1754_v37 }
 0x5c9   :  { %v1762_v15 = vrot.slane %v1735_v9, %v3665_v12 }
 0x5cb   :  { %v1784_v61 = vsel %vm473_vm2, %v1762_v15, %v1783_v30 }
 0x5cc   :  { %v1738_v22 = vpop.permute.xlu1 %1737 }
 0x5cd   :  { %v1766_v49 = vrot.slane %v1738_v22, %v3665_v12 }
 0x5cf   :  { %v1785_v38 = vsel %vm475_vm3, %v1766_v49, %v1784_v61 }
 0x5d0   :  { %v1741_v48 = vpop.permute.xlu1 %1740 }
 0x5d1   :  { %v1770_v20 = vrot.slane %v1741_v48, %v3665_v12 }
 0x5d3   :  { %v1786_v19 = vsel %vm477_vm4, %v1770_v20, %v1785_v38 }
 0x5d4   :  { %v1744_v11 = vpop.permute.xlu1 %1743 }
 0x5d5   :  { %v1774_v44 = vrot.slane %v1744_v11, %v3665_v12 }
 0x5d7   :  { %v1787_v57 = vsel %vm479_vm5, %v1774_v44, %v1786_v19 }
 0x604   :  { %v2311_v46 = vpop.permute.xlu1 %2310 }
 0x605   :  { %v2314_v6 = vpop.permute.xlu0 %2313  ;;  %v2336_v15 = vrot.slane %v2311_v46, %v3665_v12 }
 0x606   :  { %v2340_v49 = vrot.slane %v2314_v6, %v3665_v12 }
 0x608   :  { %v1747_v5 = vpop.permute.xlu1 %1746  ;;  %v2365_v61 = vsel %vm471_vm1, %v2340_v49, %v2336_v15 }
 0x609   :  { %v2317_v50 = vpop.permute.xlu0 %2316  ;;  %v1778_v21 = vrot.slane %v1747_v5, %v3665_v12 }
 0x60a   :  { %v2344_v20 = vrot.slane %v2317_v50, %v3665_v12 }
 0x60b   :  { %v1788_v48 = vsel %vm481_vm6, %v1778_v21, %v1787_v57 }
 0x60c   :  { %v1750_v40 = vpop.permute.xlu1 %1749  ;;  %v2366_v38 = vsel %vm473_vm2, %v2344_v20, %v2365_v61 }
 0x60d   :  { %v1782_v9 = vrot.slane %v1750_v40, %v3665_v12  ;;  %v2320_v22 = vpop.permute.xlu0 %2319 }
 0x60e   :  { %v2348_v5 = vrot.slane %v2320_v22, %v3665_v12 }
 0x60f   :  { %v1789_v45 = vsel %vm483_vm7, %v1782_v9, %v1788_v48 }
 0x610   :  { %v1791_v11 = vsel %vm486_vm8, %v1789_v45, 0.0  ;;  %v2367_v40 = vsel %vm475_vm3, %v2348_v5, %v2366_v38 }
 0x611   :  { %v2323_v37 = vpop.permute.xlu0 %2322  ;;  %1792 = vadd.xlane.f32.xlu0 %v1791_v11 }
 0x612   :  { %v2352_v30 = vrot.slane %v2323_v37, %v3665_v12 }
 0x614   :  { %v2368_v46 = vsel %vm477_vm4, %v2352_v30, %v2367_v40 }
 0x615   :  { %v2326_v7 = vpop.permute.xlu0 %2325 }
 0x616   :  { %v2356_v21 = vrot.slane %v2326_v7, %v3665_v12 }
 0x618   :  { %v2369_v50 = vsel %vm479_vm5, %v2356_v21, %v2368_v46 }
 0x619   :  { %v2329_v44 = vpop.permute.xlu0 %2328 }
 0x61a   :  { %v2360_v19 = vrot.slane %v2329_v44, %v3665_v12 }
 0x61c   :  { %v2370_v9 = vsel %vm481_vm6, %v2360_v19, %v2369_v50 }
 0x61d   :  { %v2332_v6 = vpop.permute.xlu0 %2331 }
 0x61e   :  { %v2364_v57 = vrot.slane %v2332_v6, %v3665_v12 }
 0x620   :  { %v2371_v22 = vsel %vm483_vm7, %v2364_v57, %v2370_v9 }
 0x621   :  { %v2373_v48 = vsel %vm486_vm8, %v2371_v22, 0.0 }
 0x622   :  { %2374 = vadd.xlane.f32.xlu1 %v2373_v48  ;;  %v3001_v48 = vld [vmem:[%s4351_s5 + $0x70] sm:$0xff]  }
 0x63e   :  { %v629_v45 = vpop.xlane.xlu1 %628 }
 0x63f   :  { %3119 = vrcp.f32 %v629_v45  ;;  %v3002_v45 = vld [vmem:[%s4351_s5 + $0x30] sm:$0xff]  }
 0x64a   :  { %v1211_v11 = vpop.xlane.xlu0 %1210 }
 0x64b   :  { %3121 = vrcp.f32 %v1211_v11 }
 0x64c   :  { %v3120_v37 = vpop.eup %3119 }
 0x64d   :  { %v635_v7 = vrot.slane %v3120_v37, %v3415_v29  ;;  %v639_v15 = vrot.slane %v3120_v37, %v3801_v16  ;;  %v647_v20 = vrot.slane %v3120_v37, %v3812_v18  ;;  %v643_v5 = vrot.slane %v3120_v37, %v3804_v53 }
 0x64e   :  { %v655_v61 = vrot.slane %v3120_v37, %v3844_v4  ;;  %v651_v21 = vrot.slane %v3120_v37, %v3890_v41  ;;  %v659_v22 = vrot.slane %v3120_v37, %v3908_v31 }
 0x64f   :  { %v672_v49 = vmul.f32 %v3849_v54, %v635_v7  ;;  %v673_v12 = vmul.f32 %v3846_v25, %v639_v15  ;;  %v675_v30 = vmul.f32 %v3865_v36, %v647_v20  ;;  %v674_v44 = vmul.f32 %v3859_v60, %v643_v5  ;;  %v3003_v15 = vld [vmem:[%s4351_s5 + $0x68] sm:$0xff]   ;;  %v3007_v20 = vld [vmem:[%s4351_s5 + $0x58] sm:$0xff]   ;;  %v3010_v5 = vld [vmem:[%s4351_s5 + $0x10] sm:$0xff]  }
 0x650   :  { %v677_v54 = vmul.f32 %v3937_v59, %v655_v61  ;;  %v676_v25 = vmul.f32 %v3931_v33, %v651_v21  ;;  %v663_v7 = vrot.slane %v3120_v37, %v3857_v58  ;;  %v3005_v37 = vld [vmem:[%s4351_s5 + $0x60] sm:$0xff]  }
 0x651   :  { %682 = vperm.xlu0 %2965, %v672_v49   ;;  %687 = vperm.xlu1 %2966, %v673_v12   ;;  %v3004_v49 = vld [vmem:[%s4351_s5 + $0x28] sm:$0xff]   ;;  %v3006_v12 = vld [vmem:[%s4351_s5 + $0x20] sm:$0xff]  }
 0x652   :  { %v3013_v61 = vld [vmem:[%s4351_s5 + $0x40] sm:$0xff]  }
 0x653   :  { %v3014_v21 = vld [vmem:[%s4351_s5] sm:$0xff]  }
 0x655   :  { %697 = vperm.xlu0 %2965, %v675_v30   ;;  %692 = vperm.xlu1 %2966, %v674_v44   ;;  %v3011_v30 = vld [vmem:[%s4351_s5 + $0x48] sm:$0xff]  }
 0x656   :  { %v3012_v44 = vld [vmem:[%s4351_s5 + $0x8] sm:$0xff]  }
 0x658   :  { %v3122_v38 = vpop.eup %3121 }
 0x659   :  { %707 = vperm.xlu0 %2965, %v677_v54   ;;  %702 = vperm.xlu1 %2966, %v676_v25   ;;  %v1221_v19 = vrot.slane %v3122_v38, %v3801_v16  ;;  %v1217_v40 = vrot.slane %v3122_v38, %v3415_v29  ;;  %v1229_v46 = vrot.slane %v3122_v38, %v3812_v18 }
 0x65a   :  { %v1225_v6 = vrot.slane %v3122_v38, %v3804_v53  ;;  %v1237_v50 = vrot.slane %v3122_v38, %v3844_v4  ;;  %v1233_v57 = vrot.slane %v3122_v38, %v3890_v41  ;;  %v1245_v11 = vrot.slane %v3122_v38, %v3857_v58 }
 0x65b   :  { %v1255_v36 = vmul.f32 %v3869_v32, %v1221_v19  ;;  %v1254_v60 = vmul.f32 %v3947_v52, %v1217_v40  ;;  %v1257_v59 = vmul.f32 %v3872_v8, %v1229_v46  ;;  %v2999_v32 = vld [vmem:[%s4351_s5 + $0x78] sm:$0xff]  }
 0x65c   :  { %v1256_v33 = vmul.f32 %v3950_v43, %v1225_v6  ;;  %v3000_v52 = vld [vmem:[%s4351_s5 + $0x38] sm:$0xff]   ;;  %2853 = vmatprep.subr.bf16.mxu0 %v2999_v32  ;;  %v1259_v9 = vmul.f32 %v3875_v14, %v1237_v50  ;;  %v1258_v8 = vmul.f32 %v3953_v55, %v1233_v57  ;;  %v1241_v43 = vrot.slane %v3122_v38, %v3908_v31 }
 0x65d   :  { %1269 = vperm.xlu0 %2965, %v1255_v36   ;;  %1264 = vperm.xlu1 %2966, %v1254_v60   ;;  %v678_v55 = vmul.f32 %v3941_v35, %v659_v22  ;;  %v679_v35 = vmul.f32 %v3944_v28, %v663_v7  ;;  %v3009_v28 = vld [vmem:[%s4351_s5 + $0x50] sm:$0xff]  }
 0x65e   :  { %2854 = vmatpush3.bf16.msra.mxu0 %v3000_v52  ;;  %v1260_v14 = vmul.f32 %v3956_v0, %v1241_v43  ;;  %v1261_v0 = vmul.f32 %v3880_v42, %v1245_v11  ;;  %v3008_v42 = vld [vmem:[%s4351_s5 + $0x18] sm:$0xff]  }
 0x65f   :  { %2855 = vmatprep.subr.bf16.mxu0 %v3001_v48 }
 0x661   :  { %1279 = vperm.xlu0 %2965, %v1257_v59   ;;  %1274 = vperm.xlu1 %2966, %v1256_v33  }
 0x662   :  { %2856 = vmatpush3.bf16.msra.mxu0 %v3002_v45 }
 0x663   :  { %2857 = vmatprep.subr.bf16.mxu0 %v3003_v15 }
 0x665   :  { %1289 = vperm.xlu0 %2965, %v1259_v9   ;;  %1284 = vperm.xlu1 %2966, %v1258_v8  }
 0x666   :  { %2858 = vmatpush3.bf16.msra.mxu0 %v3004_v49  ;;  %v4238_v49 = vld [vmem:[%s4349_s2 + $0x10] sm:$0xff] }
 0x667   :  { %2859 = vmatprep.subr.bf16.mxu0 %v3005_v37 }
 0x669   :  { %1294 = vperm.xlu0 %2965, %v1260_v14   ;;  %712 = vperm.xlu1 %2966, %v678_v55  }
 0x66a   :  { %2860 = vmatpush3.bf16.msra.mxu0 %v3006_v12 }
 0x66b   :  { %2861 = vmatprep.subr.bf16.mxu0 %v3007_v20 }
 0x66d   :  { %1299 = vperm.xlu0 %2965, %v1261_v0   ;;  %717 = vperm.xlu1 %2966, %v679_v35   ;;  %v4244_v35 = vld [vmem:[%s4349_s2 + $0x18] sm:$0xff] }
 0x66e   :  { %2862 = vmatpush3.bf16.msra.mxu0 %v3008_v42 }
 0x66f   :  { %2863 = vmatprep.subr.bf16.mxu0 %v3009_v28 }
 0x672   :  { %2864 = vmatpush3.bf16.msra.mxu0 %v3010_v5 }
 0x673   :  { %2865 = vmatprep.subr.bf16.mxu0 %v3011_v30 }
 0x676   :  { %2866 = vmatpush3.bf16.msra.mxu0 %v3012_v44  ;;  %v4251_v44 = vld [vmem:[%s4349_s2 + $0x20] sm:$0xff] }
 0x677   :  { %2867 = vmatprep.subr.bf16.mxu0 %v3013_v61 }
 0x67a   :  { %2868 = vmatpush3.bf16.msra.mxu0 %v3014_v21 }
 0x69a   :  { %v1793_v54 = vpop.xlane.xlu0 %1792 }
 0x69b   :  { %3123 = vrcp.f32 %v1793_v54 }
 0x6a8   :  { %v3124_v25 = vpop.eup %3123 }
 0x6a9   :  { %v1803_v38 = vrot.slane %v3124_v25, %v3801_v16  ;;  %v1799_v19 = vrot.slane %v3124_v25, %v3415_v29  ;;  %v1807_v46 = vrot.slane %v3124_v25, %v3804_v53  ;;  %v1811_v59 = vrot.slane %v3124_v25, %v3812_v18 }
 0x6aa   :  { %v1815_v50 = vrot.slane %v3124_v25, %v3890_v41 }
 0x6ab   :  { %v2375_v40 = vpop.xlane.xlu1 %2374  ;;  %v1837_v36 = vmul.f32 %v3973_v3, %v1803_v38  ;;  %v1836_v60 = vmul.f32 %v3971_v34, %v1799_v19  ;;  %v1838_v6 = vmul.f32 %v3977_v51, %v1807_v46  ;;  %v1839_v33 = vmul.f32 %v3980_v47, %v1811_v59  ;;  %v4257_v38 = vld [vmem:[%s4349_s2 + $0x28] sm:$0xff] }
 0x6ac   :  { %3125 = vrcp.f32 %v2375_v40  ;;  %v1840_v57 = vmul.f32 %v3983_v17, %v1815_v50  ;;  %v1819_v3 = vrot.slane %v3124_v25, %v3844_v4  ;;  %v1823_v17 = vrot.slane %v3124_v25, %v3908_v31 }
 0x6ad   :  { %1851 = vperm.xlu0 %2965, %v1837_v36   ;;  %1846 = vperm.xlu1 %2966, %v1836_v60  }
 0x6ae   :  { %v1841_v52 = vmul.f32 %v3986_v23, %v1819_v3 }
 0x6b1   :  { %1856 = vperm.xlu1 %2966, %v1838_v6  }
 0x6b5   :  { %1861 = vperm.xlu1 %2966, %v1839_v33  }
 0x6b9   :  { %v3126_v34 = vpop.eup %3125  ;;  %1866 = vperm.xlu1 %2966, %v1840_v57  }
 0x6ba   :  { %v2385_v32 = vrot.slane %v3126_v34, %v3801_v16  ;;  %v2381_v51 = vrot.slane %v3126_v34, %v3415_v29  ;;  %v2389_v8 = vrot.slane %v3126_v34, %v3804_v53  ;;  %v2393_v22 = vrot.slane %v3126_v34, %v3812_v18 }
 0x6bb   :  { %v1842_v16 = vmul.f32 %v4020_v13, %v1823_v17  ;;  %v1827_v29 = vrot.slane %v3124_v25, %v3857_v58  ;;  %v2397_v53 = vrot.slane %v3126_v34, %v3890_v41  ;;  %v2405_v45 = vrot.slane %v3126_v34, %v3908_v31  ;;  %v4224_v41 = vld [vmem:[%s4349_s2 + $0x8] sm:$0xff] }
 0x6bc   :  { %v2419_v9 = vmul.f32 %v4016_v56, %v2385_v32  ;;  %v2418_v47 = vmul.f32 %v4012_v26, %v2381_v51  ;;  %v2420_v43 = vmul.f32 %v4023_v62, %v2389_v8  ;;  %v2421_v23 = vmul.f32 %v4029_v27, %v2393_v22 }
 0x6bd   :  { %1871 = vperm.xlu1 %2966, %v1841_v52   ;;  %v1843_v26 = vmul.f32 %v4027_v2, %v1827_v29  ;;  %v2422_v56 = vmul.f32 %v4033_v10, %v2397_v53  ;;  %v2401_v62 = vrot.slane %v3126_v34, %v3844_v4  ;;  %v4230_v2 = vld [vmem:[%s4349_s2] sm:$0xff]  ;;  %v2424_v31 = vmul.f32 %v4039_v39, %v2405_v45 }
 0x6be   :  { %2433 = vperm.xlu0 %2965, %v2419_v9   ;;  %v2409_v11 = vrot.slane %v3126_v34, %v3857_v58 }
 0x6bf   :  { %v2423_v13 = vmul.f32 %v4036_v1, %v2401_v62 }
 0x6c0   :  { %v2425_v28 = vmul.f32 %v4042_v24, %v2409_v11 }
 0x6c1   :  { %2428 = vperm.xlu1 %2966, %v2418_v47  }
 0x6c2   :  { %2438 = vperm.xlu0 %2965, %v2420_v43  }
 0x6c5   :  { %1876 = vperm.xlu1 %2966, %v1842_v16  }
 0x6c6   :  { %2443 = vperm.xlu0 %2965, %v2421_v23  }
 0x6c9   :  { %1881 = vperm.xlu1 %2966, %v1843_v26  }
 0x6ca   :  { %2448 = vperm.xlu0 %2965, %v2422_v56  }
 0x6cc   :  { %v688_v18 = vpop.permute.xlu1 %687  ;;  %v683_v48 = vpop.permute.xlu0 %682 }
 0x6cd   :  { %v721_v27 = vmul.f32 %v4224_v41, %v688_v18  ;;  %v720_v4 = vmul.f32 %v4230_v2, %v683_v48 }
 0x6ce   :  { %2453 = vperm.xlu0 %2965, %v2423_v13  }
 0x6cf   :  { %v734_v10 = vrot.slane %v721_v27, 4  ;;  %v728_v14 = vrot.slane %v720_v4, 4 }
 0x6d0   :  { %v693_v1 = vpop.permute.xlu1 %692  ;;  %v698_v55 = vpop.permute.xlu0 %697 }
 0x6d1   :  { %v735_v7 = vadd.f32 %v734_v10, %v721_v27  ;;  %v729_v15 = vadd.f32 %v728_v14, %v720_v4  ;;  %v722_v0 = vmul.f32 %v4238_v49, %v693_v1  ;;  %v723_v37 = vmul.f32 %v4244_v35, %v698_v55 }
 0x6d2   :  { %2458 = vperm.xlu0 %2965, %v2424_v31  }
 0x6d3   :  { %v736_v39 = vrot.slane %v735_v7, 2  ;;  %v730_v12 = vrot.slane %v729_v15, 2  ;;  %v740_v58 = vrot.slane %v722_v0, 4  ;;  %v746_v30 = vrot.slane %v723_v37, 4 }
 0x6d4   :  { %v703_v20 = vpop.permute.xlu1 %702  ;;  %v708_v42 = vpop.permute.xlu0 %707 }
 0x6d5   :  { %v741_v5 = vadd.f32 %v740_v58, %v722_v0  ;;  %v724_v61 = vmul.f32 %v4251_v44, %v703_v20  ;;  %v737_v21 = vadd.f32 %v736_v39, %v735_v7  ;;  %v731_v54 = vadd.f32 %v730_v12, %v729_v15 }
 0x6d6   :  { %2463 = vperm.xlu0 %2965, %v2425_v28   ;;  %v725_v24 = vmul.f32 %v4257_v38, %v708_v42  ;;  %v747_v60 = vadd.f32 %v746_v30, %v723_v37 }
 0x6d7   :  { %v752_v25 = vrot.slane %v724_v61, 4  ;;  %v742_v36 = vrot.slane %v741_v5, 2  ;;  %v738_v59 = vrot.slane %v737_v21, 1  ;;  %v732_v33 = vrot.slane %v731_v54, 1 }
 0x6d8   :  { %v1265_v19 = vpop.permute.xlu1 %1264  ;;  %v1270_v40 = vpop.permute.xlu0 %1269  ;;  %v758_v57 = vrot.slane %v725_v24, 4  ;;  %v748_v47 = vrot.slane %v747_v60, 2 }
 0x6d9   :  { %v1302_v46 = vmul.f32 %v4230_v2, %v1265_v19  ;;  %v1303_v6 = vmul.f32 %v4224_v41, %v1270_v40  ;;  %v753_v50 = vadd.f32 %v752_v25, %v724_v61  ;;  %v743_v8 = vadd.f32 %v742_v36, %v741_v5  ;;  %v4270_v61 = vld [vmem:[%s4349_s2 + $0x30] sm:$0xff] }
 0x6da   :  { %v739_v22 = vadd.f32 %v738_v59, %v737_v21  ;;  %v733_v23 = vadd.f32 %v732_v33, %v731_v54  ;;  %v759_v26 = vadd.f32 %v758_v57, %v725_v24  ;;  %v749_v10 = vadd.f32 %v748_v47, %v747_v60 }
 0x6db   :  { %v1310_v3 = vrot.slane %v1302_v46, 4  ;;  %v1316_v34 = vrot.slane %v1303_v6, 4  ;;  %v754_v53 = vrot.slane %v753_v50, 2  ;;  %v744_v4 = vrot.slane %v743_v8, 1 }
 0x6dc   :  { %v1275_v32 = vpop.permute.xlu1 %1274  ;;  %v1280_v52 = vpop.permute.xlu0 %1279  ;;  %v788_v15 = vsel %vm471_vm1, %v739_v22, %v733_v23  ;;  %v760_v0 = vrot.slane %v759_v26, 2  ;;  %v750_v24 = vrot.slane %v749_v10, 1 }
 0x6dd   :  { %v1304_v51 = vmul.f32 %v4238_v49, %v1275_v32  ;;  %v1305_v9 = vmul.f32 %v4244_v35, %v1280_v52  ;;  %v1311_v17 = vadd.f32 %v1310_v3, %v1302_v46  ;;  %v1317_v43 = vadd.f32 %v1316_v34, %v1303_v6 }
 0x6de   :  { %v755_v58 = vadd.f32 %v754_v53, %v753_v50  ;;  %v745_v25 = vadd.f32 %v744_v4, %v743_v8  ;;  %v761_v57 = vadd.f32 %v760_v0, %v759_v26  ;;  %v751_v47 = vadd.f32 %v750_v24, %v749_v10 }
 0x6df   :  { %v1322_v16 = vrot.slane %v1304_v51, 4  ;;  %v1328_v29 = vrot.slane %v1305_v9, 4  ;;  %v1312_v56 = vrot.slane %v1311_v17, 2  ;;  %v1318_v48 = vrot.slane %v1317_v43, 2 }
 0x6e0   :  { %v1285_v62 = vpop.permute.xlu1 %1284  ;;  %v1290_v18 = vpop.permute.xlu0 %1289  ;;  %v756_v50 = vrot.slane %v755_v58, 1  ;;  %v789_v26 = vsel %vm473_vm2, %v745_v25, %v788_v15 }
 0x6e1   :  { %v1323_v13 = vadd.f32 %v1322_v16, %v1304_v51  ;;  %v1329_v45 = vadd.f32 %v1328_v29, %v1305_v9  ;;  %v1306_v27 = vmul.f32 %v4251_v44, %v1285_v62  ;;  %v1313_v14 = vadd.f32 %v1312_v56, %v1311_v17  ;;  %v4277_v9 = vld [vmem:[%s4349_s2 + $0x38] sm:$0xff] }
 0x6e2   :  { %v1307_v1 = vmul.f32 %v4257_v38, %v1290_v18  ;;  %v1319_v55 = vadd.f32 %v1318_v48, %v1317_v43  ;;  %v762_v56 = vrot.slane %v761_v57, 1  ;;  %v757_v48 = vadd.f32 %v756_v50, %v755_v58  ;;  %v4358_v50 = vld [vmem:[#allocation3_spill] sm:$0xff] }
 0x6e3   :  { %v1324_v31 = vrot.slane %v1323_v13, 2  ;;  %v1330_v11 = vrot.slane %v1329_v45, 2  ;;  %v1334_v7 = vrot.slane %v1306_v27, 4  ;;  %v1314_v20 = vrot.slane %v1313_v14, 1 }
 0x6e4   :  { %v1340_v37 = vrot.slane %v1307_v1, 4  ;;  %v713_v39 = vpop.permute.xlu1 %712  ;;  %v1295_v12 = vpop.permute.xlu0 %1294  ;;  %v1320_v5 = vrot.slane %v1319_v55, 1  ;;  %v790_v15 = vsel %vm475_vm3, %v751_v47, %v789_v26 }
 0x6e5   :  { %v1325_v42 = vadd.f32 %v1324_v31, %v1323_v13  ;;  %v1335_v28 = vadd.f32 %v1334_v7, %v1306_v27  ;;  %v726_v21 = vmul.f32 %v4270_v61, %v713_v39  ;;  %v1308_v54 = vmul.f32 %v4270_v61, %v1295_v12 }
 0x6e6   :  { %v1341_v30 = vadd.f32 %v1340_v37, %v1307_v1  ;;  %v1331_v19 = vadd.f32 %v1330_v11, %v1329_v45  ;;  %v1315_v3 = vadd.f32 %v1314_v20, %v1313_v14  ;;  %v1321_v32 = vadd.f32 %v1320_v5, %v1319_v55 }
 0x6e7   :  { %v1336_v40 = vrot.slane %v1335_v28, 2  ;;  %v1326_v36 = vrot.slane %v1325_v42, 1  ;;  %v764_v46 = vrot.slane %v726_v21, 4  ;;  %v1346_v6 = vrot.slane %v1308_v54, 4 }
 0x6e8   :  { %v1342_v60 = vrot.slane %v1341_v30, 2  ;;  %v718_v59 = vpop.permute.xlu1 %717  ;;  %v1300_v33 = vpop.permute.xlu0 %1299  ;;  %v1332_v17 = vrot.slane %v1331_v19, 1  ;;  %v1370_v13 = vsel %vm471_vm1, %v1321_v32, %v1315_v3  ;;  %v763_v39 = vadd.f32 %v762_v56, %v761_v57 }
 0x6e9   :  { %v1337_v34 = vadd.f32 %v1336_v40, %v1335_v28  ;;  %v765_v52 = vadd.f32 %v764_v46, %v726_v21  ;;  %v1347_v51 = vadd.f32 %v1346_v6, %v1308_v54  ;;  %v727_v8 = vmul.f32 %v4277_v9, %v718_v59 }
 0x6ea   :  { %v1343_v43 = vadd.f32 %v1342_v60, %v1341_v30  ;;  %v1309_v22 = vmul.f32 %v4277_v9, %v1300_v33  ;;  %v1327_v16 = vadd.f32 %v1326_v36, %v1325_v42  ;;  %v1333_v4 = vadd.f32 %v1332_v17, %v1331_v19 }
 0x6eb   :  { %v1338_v29 = vrot.slane %v1337_v34, 1  ;;  %v766_v23 = vrot.slane %v765_v52, 2  ;;  %v1348_v53 = vrot.slane %v1347_v51, 2  ;;  %v770_v62 = vrot.slane %v727_v8, 4 }
 0x6ec   :  { %v1352_v18 = vrot.slane %v1309_v22, 4  ;;  %v1344_v10 = vrot.slane %v1343_v43, 1  ;;  %v1371_v55 = vsel %vm473_vm2, %v1327_v16, %v1370_v13  ;;  %v791_v28 = vsel %vm477_vm4, %v757_v48, %v790_v15 }
 0x6ed   :  { %v767_v45 = vadd.f32 %v766_v23, %v765_v52  ;;  %v1349_v27 = vadd.f32 %v1348_v53, %v1347_v51  ;;  %v771_v14 = vadd.f32 %v770_v62, %v727_v8  ;;  %v1339_v31 = vadd.f32 %v1338_v29, %v1337_v34 }
 0x6ee   :  { %v1353_v1 = vadd.f32 %v1352_v18, %v1309_v22  ;;  %v1372_v12 = vsel %vm475_vm3, %v1333_v4, %v1371_v55  ;;  %v1345_v58 = vadd.f32 %v1344_v10, %v1343_v43  ;;  %v792_v40 = vsel %vm479_vm5, %v763_v39, %v791_v28 }
 0x6ef   :  { %v768_v11 = vrot.slane %v767_v45, 1  ;;  %v1350_v7 = vrot.slane %v1349_v27, 1  ;;  %v772_v0 = vrot.slane %v771_v14, 2  ;;  %v1373_v5 = vsel %vm477_vm4, %v1339_v31, %v1372_v12 }
 0x6f0   :  { %v1354_v37 = vrot.slane %v1353_v1, 2  ;;  %v1374_v36 = vsel %vm479_vm5, %v1345_v58, %v1373_v5  ;;  %v2552_v57 = vpack.c.bf16 %v4358_v50, %v3408_v63 }
 0x6f1   :  { %v773_v20 = vadd.f32 %v772_v0, %v771_v14  ;;  %v769_v30 = vadd.f32 %v768_v11, %v767_v45  ;;  %v1351_v21 = vadd.f32 %v1350_v7, %v1349_v27 }
 0x6f2   :  { %v1355_v42 = vadd.f32 %v1354_v37, %v1353_v1 }
 0x6f3   :  { %v774_v54 = vrot.slane %v773_v20, 1  ;;  %v793_v60 = vsel %vm481_vm6, %v769_v30, %v792_v40  ;;  %v1375_v46 = vsel %vm481_vm6, %v1351_v21, %v1374_v36 }
 0x6f4   :  { %v1356_v25 = vrot.slane %v1355_v42, 1 }
 0x6f5   :  { %v775_v24 = vadd.f32 %v774_v54, %v773_v20 }
 0x6f6   :  { %v1357_v19 = vadd.f32 %v1356_v25, %v1355_v42 }
 0x6f7   :  { %v794_v6 = vsel %vm483_vm7, %v775_v24, %v793_v60 }
 0x6f8   :  { %v1376_v59 = vsel %vm483_vm7, %v1357_v19, %v1375_v46 }
 0x6f9   :  { %v2553_v33 = vpack.c.bf16 %v1376_v59, %v794_v6 }
 0x6fb   :  { %2723 = vmatprep.mubr.bf16.mxu0 %v2553_v33 }
 0x6fc   :  { %2724 = vmatmul.mubr.bf16.vlgmr.msra.gmra.mxu0 %v2552_v57 }
 0x728   :  { %v1847_v3 = vpop.permute.xlu1 %1846  ;;  %v1852_v52 = vpop.permute.xlu0 %1851 }
 0x729   :  { %v1884_v51 = vmul.f32 %v4230_v2, %v1847_v3  ;;  %v1885_v47 = vmul.f32 %v4224_v41, %v1852_v52 }
 0x72b   :  { %v1892_v17 = vrot.slane %v1884_v51, 4  ;;  %v1898_v16 = vrot.slane %v1885_v47, 4 }
 0x72c   :  { %v1857_v34 = vpop.permute.xlu1 %1856 }
 0x72d   :  { %v1893_v29 = vadd.f32 %v1892_v17, %v1884_v51  ;;  %v1886_v53 = vmul.f32 %v4238_v49, %v1857_v34  ;;  %v1899_v62 = vadd.f32 %v1898_v16, %v1885_v47 }
 0x72f   :  { %v1894_v45 = vrot.slane %v1893_v29, 2  ;;  %v1904_v4 = vrot.slane %v1886_v53, 4  ;;  %v1900_v55 = vrot.slane %v1899_v62, 2 }
 0x730   :  { %v1862_v32 = vpop.permute.xlu1 %1861 }
 0x731   :  { %v1887_v18 = vmul.f32 %v4244_v35, %v1862_v32  ;;  %v1895_v37 = vadd.f32 %v1894_v45, %v1893_v29  ;;  %v1905_v39 = vadd.f32 %v1904_v4, %v1886_v53  ;;  %v1901_v28 = vadd.f32 %v1900_v55, %v1899_v62 }
 0x733   :  { %v1896_v24 = vrot.slane %v1895_v37, 1  ;;  %v1906_v60 = vrot.slane %v1905_v39, 2  ;;  %v1902_v33 = vrot.slane %v1901_v28, 1 }
 0x734   :  { %v1867_v8 = vpop.permute.xlu1 %1866 }
 0x735   :  { %v1888_v10 = vmul.f32 %v4251_v44, %v1867_v8  ;;  %v1897_v51 = vadd.f32 %v1896_v24, %v1895_v37  ;;  %v1903_v53 = vadd.f32 %v1902_v33, %v1901_v28 }
 0x737   :  { %v1916_v12 = vrot.slane %v1888_v10, 4  ;;  %v1952_v33 = vsel %vm471_vm1, %v1903_v53, %v1897_v51 }
 0x738   :  { %v1872_v43 = vpop.permute.xlu1 %1871 }
 0x739   :  { %v2434_v22 = vpop.permute.xlu0 %2433  ;;  %v1889_v31 = vmul.f32 %v4257_v38, %v1872_v43  ;;  %v1917_v46 = vadd.f32 %v1916_v12, %v1888_v10  ;;  %v1907_v43 = vadd.f32 %v1906_v60, %v1905_v39 }
 0x73a   :  { %v2467_v63 = vmul.f32 %v4224_v41, %v2434_v22 }
 0x73b   :  { %v1922_v5 = vrot.slane %v1889_v31, 4  ;;  %v1918_v22 = vrot.slane %v1917_v46, 2  ;;  %v1908_v10 = vrot.slane %v1907_v43, 1 }
 0x73c   :  { %v2429_v23 = vpop.permute.xlu1 %2428  ;;  %v2480_v14 = vrot.slane %v2467_v63, 4 }
 0x73d   :  { %v2466_v26 = vmul.f32 %v4230_v2, %v2429_v23  ;;  %v2439_v56 = vpop.permute.xlu0 %2438  ;;  %v1910_v2 = vrot.slane %v1887_v18, 4  ;;  %v1923_v50 = vadd.f32 %v1922_v5, %v1889_v31 }
 0x73e   :  { %v2468_v13 = vmul.f32 %v4238_v49, %v2439_v56  ;;  %v2481_v58 = vadd.f32 %v2480_v14, %v2467_v63  ;;  %v1919_v14 = vadd.f32 %v1918_v22, %v1917_v46 }
 0x73f   :  { %v2474_v48 = vrot.slane %v2466_v26, 4  ;;  %v1911_v21 = vadd.f32 %v1910_v2, %v1887_v18  ;;  %v1924_v63 = vrot.slane %v1923_v50, 2 }
 0x740   :  { %v1877_v27 = vpop.permute.xlu1 %1876  ;;  %v2486_v7 = vrot.slane %v2468_v13, 4  ;;  %v2482_v6 = vrot.slane %v2481_v58, 2 }
 0x741   :  { %v2444_v1 = vpop.permute.xlu0 %2443  ;;  %v2475_v11 = vadd.f32 %v2474_v48, %v2466_v26  ;;  %v1890_v0 = vmul.f32 %v4270_v61, %v1877_v27  ;;  %v1912_v34 = vrot.slane %v1911_v21, 2 }
 0x742   :  { %v2469_v41 = vmul.f32 %v4244_v35, %v2444_v1  ;;  %v2487_v54 = vadd.f32 %v2486_v7, %v2468_v13  ;;  %v2483_v16 = vadd.f32 %v2482_v6, %v2481_v58 }
 0x743   :  { %v2476_v35 = vrot.slane %v2475_v11, 2  ;;  %v1928_v25 = vrot.slane %v1890_v0, 4  ;;  %v1913_v62 = vadd.f32 %v1912_v34, %v1911_v21 }
 0x744   :  { %v2492_v15 = vrot.slane %v2469_v41, 4  ;;  %v1882_v49 = vpop.permute.xlu1 %1881  ;;  %v2484_v1 = vrot.slane %v2483_v16, 1 }
 0x745   :  { %v1891_v20 = vmul.f32 %v4277_v9, %v1882_v49  ;;  %v2449_v42 = vpop.permute.xlu0 %2448  ;;  %v2477_v32 = vadd.f32 %v2476_v35, %v2475_v11  ;;  %v1929_v52 = vadd.f32 %v1928_v25, %v1890_v0  ;;  %v1914_v0 = vrot.slane %v1913_v62, 1 }
 0x746   :  { %v2470_v30 = vmul.f32 %v4251_v44, %v2449_v42  ;;  %v2493_v19 = vadd.f32 %v2492_v15, %v2469_v41  ;;  %v2488_v44 = vrot.slane %v2487_v54, 2  ;;  %v1925_v41 = vadd.f32 %v1924_v63, %v1923_v50 }
 0x747   :  { %v1934_v40 = vrot.slane %v1891_v20, 4  ;;  %v1930_v48 = vrot.slane %v1929_v52, 2  ;;  %v1920_v42 = vrot.slane %v1919_v14, 1  ;;  %v2485_v28 = vadd.f32 %v2484_v1, %v2483_v16 }
 0x748   :  { %v2498_v36 = vrot.slane %v2470_v30, 4  ;;  %v2494_v8 = vrot.slane %v2493_v19, 2  ;;  %v2489_v18 = vadd.f32 %v2488_v44, %v2487_v54  ;;  %v1915_v25 = vadd.f32 %v1914_v0, %v1913_v62 }
 0x749   :  { %v2454_v59 = vpop.permute.xlu0 %2453  ;;  %v1935_v47 = vadd.f32 %v1934_v40, %v1891_v20  ;;  %v1931_v15 = vadd.f32 %v1930_v48, %v1929_v52  ;;  %v1909_v20 = vadd.f32 %v1908_v10, %v1907_v43  ;;  %v1921_v6 = vadd.f32 %v1920_v42, %v1919_v14 }
 0x74a   :  { %v2499_v57 = vadd.f32 %v2498_v36, %v2470_v30  ;;  %v2471_v3 = vmul.f32 %v4257_v38, %v2454_v59  ;;  %v2478_v38 = vrot.slane %v2477_v32, 1  ;;  %v2495_v13 = vadd.f32 %v2494_v8, %v2493_v19 }
 0x74b   :  { %v1936_v45 = vrot.slane %v1935_v47, 2  ;;  %v2490_v37 = vrot.slane %v2489_v18, 1  ;;  %v1926_v30 = vrot.slane %v1925_v41, 1  ;;  %v1932_v19 = vrot.slane %v1931_v15, 1 }
 0x74c   :  { %v2504_v17 = vrot.slane %v2471_v3, 4  ;;  %v2500_v29 = vrot.slane %v2499_v57, 2  ;;  %v2496_v49 = vrot.slane %v2495_v13, 1  ;;  %v1953_v34 = vsel %vm473_vm2, %v1909_v20, %v1952_v33 }
 0x74d   :  { %v2459_v23 = vpop.permute.xlu0 %2458  ;;  %v1937_v39 = vadd.f32 %v1936_v45, %v1935_v47  ;;  %v1927_v50 = vadd.f32 %v1926_v30, %v1925_v41  ;;  %v1933_v44 = vadd.f32 %v1932_v19, %v1931_v15  ;;  %v1954_v8 = vsel %vm475_vm3, %v1915_v25, %v1953_v34  ;;  %v2800_v45 = vld [vmem:[%s4352_s6] ss:$0 sm:$0xff] }
 0x74e   :  { %v2505_v26 = vadd.f32 %v2504_v17, %v2471_v3  ;;  %v2472_v56 = vmul.f32 %v4270_v61, %v2459_v23  ;;  %v2501_v55 = vadd.f32 %v2500_v29, %v2499_v57  ;;  %v2479_v61 = vadd.f32 %v2478_v38, %v2477_v32  ;;  %v3135_v38 = vld [vmem:[%s4350_s8] sm:$0xff] }
 0x74f   :  { %v2497_v40 = vadd.f32 %v2496_v49, %v2495_v13  ;;  %v1938_v36 = vrot.slane %v1937_v39, 1  ;;  %v1955_v22 = vsel %vm477_vm4, %v1921_v6, %v1954_v8 }
 0x750   :  { %v2506_v27 = vrot.slane %v2505_v26, 2  ;;  %v2510_v4 = vrot.slane %v2472_v56, 4  ;;  %v2502_v5 = vrot.slane %v2501_v55, 1  ;;  %v2534_v24 = vsel %vm471_vm1, %v2485_v28, %v2479_v61 }
 0x751   :  { %v2464_v31 = vpop.permute.xlu0 %2463  ;;  %v1939_v17 = vadd.f32 %v1938_v36, %v1937_v39  ;;  %v1956_v29 = vsel %vm479_vm5, %v1927_v50, %v1955_v22 }
 0x752   :  { %v2507_v2 = vadd.f32 %v2506_v27, %v2505_v26  ;;  %v2511_v11 = vadd.f32 %v2510_v4, %v2472_v56  ;;  %v2473_v7 = vmul.f32 %v4277_v9, %v2464_v31  ;;  %v2491_v9 = vadd.f32 %v2490_v37, %v2489_v18  ;;  %v4359_v18 = vld [vmem:[#allocation4_spill] sm:$0xff] }
 0x753   :  { %v2503_v59 = vadd.f32 %v2502_v5, %v2501_v55  ;;  %v1957_v53 = vsel %vm481_vm6, %v1933_v44, %v1956_v29  ;;  %v2554_v48 = vpack.c.bf16 %v3135_v38, %v4359_v18 }
 0x754   :  { %v2512_v12 = vrot.slane %v2511_v11, 2  ;;  %v2516_v58 = vrot.slane %v2473_v7, 4  ;;  %v2508_v21 = vrot.slane %v2507_v2, 1  ;;  %v2535_v32 = vsel %vm473_vm2, %v2491_v9, %v2534_v24 }
 0x755   :  { %v2536_v47 = vsel %vm475_vm3, %v2497_v40, %v2535_v32  ;;  %v1958_v26 = vsel %vm483_vm7, %v1939_v17, %v1957_v53 }
 0x756   :  { %v2513_v35 = vadd.f32 %v2512_v12, %v2511_v11  ;;  %v2517_v54 = vadd.f32 %v2516_v58, %v2473_v7  ;;  %v2509_v57 = vadd.f32 %v2508_v21, %v2507_v2  ;;  %v2537_v16 = vsel %vm477_vm4, %v2503_v59, %v2536_v47 }
 0x758   :  { %v2514_v60 = vrot.slane %v2513_v35, 1  ;;  %v2518_v46 = vrot.slane %v2517_v54, 2  ;;  %v2538_v23 = vsel %vm479_vm5, %v2509_v57, %v2537_v16 }
 0x75a   :  { %v2519_v3 = vadd.f32 %v2518_v46, %v2517_v54  ;;  %v2515_v52 = vadd.f32 %v2514_v60, %v2513_v35 }
 0x75c   :  { %v2520_v43 = vrot.slane %v2519_v3, 1  ;;  %v2539_v63 = vsel %vm481_vm6, %v2515_v52, %v2538_v23 }
 0x75e   :  { %v2521_v51 = vadd.f32 %v2520_v43, %v2519_v3 }
 0x760   :  { %v2540_v56 = vsel %vm483_vm7, %v2521_v51, %v2539_v63 }
 0x761   :  { %v2555_v62 = vpack.c.bf16 %v2540_v56, %v1958_v26 }
 0x763   :  { %2731 = vmatprep.mubr.bf16.mxu0 %v2555_v62 }
 0x764   :  { %2732 = vmatmul.mubr.bf16.gmra.mxu0 %v2554_v48 }
 0x7bc   :  { %v2869_v13 = vpop.f32.mrf.mxu0 }
 0x7be   :  { %v2870_v27 = vpop.f32.mrf.mxu0 }
 0x7bf   :  { %v2871_v4 = vadd.f32 %v2870_v27, %v2869_v13 }
 0x7c0   :  { %v2872_v10 = vpop.f32.mrf.mxu0 }
 0x7c1   :  { %v2726_v14 = vadd.f32 %v2871_v4, %v2800_v45 }
 0x7c2   :  { %v2873_v1 = vpop.f32.mrf.mxu0 }
 0x7c3   :  { %2740 = vst [vmem:[%s4353_s7] sm:$0xff] %v2726_v14  ;;  %v2874_v55 = vadd.f32 %v2873_v1, %v2872_v10 }
 0x7c5   :  { %v2729_v31 = vadd.f32 %v2874_v55, %v2800_v45 }
 0x7c7   :  { %2741 = vst [vmem:[%s4353_s7 + $0x8] sm:$0xff] %v2729_v31 }
 0x824   :  { %v2875_v41 = vpop.f32.mrf.mxu0 }
 0x826   :  { %v2876_v2 = vpop.f32.mrf.mxu0 }
 0x827   :  { %v2877_v11 = vadd.f32 %v2876_v2, %v2875_v41 }
 0x828   :  { %v2878_v7 = vpop.f32.mrf.mxu0 }
 0x829   :  { %v2734_v0 = vadd.f32 %v2877_v11, %v2800_v45 }
 0x82a   :  { %v2879_v61 = vpop.f32.mrf.mxu0 }
 0x82b   :  { %2742 = vst [vmem:[%s4353_s7 + $0x10] sm:$0xff] %v2734_v0  ;;  %v2880_v37 = vadd.f32 %v2879_v61, %v2878_v7 }
 0x82d   :  { %v2737_v15 = vadd.f32 %v2880_v37, %v2800_v45 }
 0x82f   :  { %2743 = vst [vmem:[%s4353_s7 + $0x18] sm:$0xff] %v2737_v15 }

</bundles_post_ra>
